<compile_context>
chip_gen: v5e
topology: v5e:2x2
jax: 0.10.0
libtpu: 0.0.40
codegen_flags: <defaults>
</compile_context>

<pallas_src>
import functools

import jax
import jax.numpy as jnp
from jax.experimental import pallas as pl
from jax.experimental.pallas import tpu as pltpu

_LN_EPS = 1e-5          # nn.LayerNorm default eps
_LEAKY_SLOPE = 0.01     # nn.LeakyReLU default negative_slope


def _layernorm(x, gamma, beta):
    """LayerNorm over the last (channel) axis of a 2-D (tokens, C) tensor."""
    mu = jnp.mean(x, axis=-1, keepdims=True)
    xc = x - mu
    var = jnp.mean(xc * xc, axis=-1, keepdims=True)
    return xc * jax.lax.rsqrt(var + _LN_EPS) * gamma + beta


def _disc_block_kernel(s_ref,
                       x_ref, noise_ref,
                       ln1_g_ref, ln1_b_ref,
                       wqkv_ref, wp_ref, bp_ref,
                       ln2_g_ref, ln2_b_ref,
                       w1_ref, b1_ref, w2_ref, b2_ref,
                       o_ref,
                       xf_ref, acc_ref,
                       *, heads_per_block, head_dim, block_b, seq_len,
                       channels, mlp_hidden, mlp_chunk):
    """Grid = (batch_blocks, head_blocks).  One head block of one batch block
    per step.

    s_ref    : SMEM (1,)                 noise_strength_1 (scalar prefetch)
    x_ref    : VMEM (Bb, N, C) f32       input tokens (resident across hb)
    noise    : VMEM (Bb, N, 1) f32       per-token gaussian noise
    wqkv_ref : VMEM (n_hb, C, 3*HD) bf16 per-head-block [q|k|v] slabs (q scaled)
    wp_ref   : VMEM (n_hb, HD, C) bf16   per-head-block proj slabs
    xf_ref   : VMEM (Bb*N, C) bf16       LN1(x) + noise (cached at hb == 0)
    acc_ref  : VMEM (Bb*N, C) f32        attention-output accumulator
    """
    hb = pl.program_id(1)
    Bb, N, hd, Hb = block_b, seq_len, head_dim, heads_per_block
    C, Ch = channels, mlp_hidden
    HD = Hb * hd
    M = Bb * N

    # ---- head-block 0: LN1 + per-token noise (cached), bias-init accumulator
    @pl.when(hb == 0)
    def _():
        x2 = x_ref[...].astype(jnp.float32).reshape(M, C)
        h1 = _layernorm(x2, ln1_g_ref[...], ln1_b_ref[...])           # (M, C)
        xn = h1.reshape(Bb, N, C) + noise_ref[...] * s_ref[0]         # + noise
        xf_ref[...] = xn.reshape(M, C).astype(jnp.bfloat16)
        acc_ref[...] = jnp.broadcast_to(bp_ref[...], (M, C))          # proj bias

    xf = xf_ref[...]                                                  # (M, C) bf16

    # ---- full-width QKV projection for this head block --------------------
    # (M, C) @ (C, 3*HD); attention scale already folded into the Q columns.
    qkv = jnp.dot(xf, wqkv_ref[hb],
                  preferred_element_type=jnp.float32).astype(jnp.bfloat16)

    # ---- per-head attention core (Hb is small by construction) ------------
    o_parts = []
    for i in range(Hb):
        q_h = qkv[:, i * hd:(i + 1) * hd].reshape(Bb, N, hd)
        k_h = qkv[:, HD + i * hd:HD + (i + 1) * hd].reshape(Bb, N, hd)
        v_h = qkv[:, 2 * HD + i * hd:2 * HD + (i + 1) * hd].reshape(Bb, N, hd)
        att = jnp.einsum('bnd,bmd->bnm', q_h, k_h,
                         preferred_element_type=jnp.float32)          # (Bb, N, N)
        att = att - jnp.max(att, axis=-1, keepdims=True)
        e = jnp.exp(att)
        p = (e * pl.reciprocal(jnp.sum(e, axis=-1, keepdims=True),
                               approx=True)).astype(jnp.bfloat16)
        o_parts.append(jnp.einsum('bnm,bmd->bnd', p, v_h,
                                  preferred_element_type=jnp.float32))

    # concat-of-heads fused into the projection with a DEEP (HD) contraction.
    o_blk = jnp.concatenate(o_parts, axis=-1).astype(jnp.bfloat16).reshape(M, HD)
    acc_ref[...] += jnp.dot(o_blk, wp_ref[hb],
                            preferred_element_type=jnp.float32)       # (M, C)

    # ---- last head block: residual, LN2, MLP(LeakyReLU), residual ---------
    @pl.when(hb == pl.num_programs(1) - 1)
    def _():
        x2 = x_ref[...].astype(jnp.float32).reshape(M, C)
        x1 = x2 + acc_ref[...]                                        # gain = 1
        h2 = _layernorm(x1, ln2_g_ref[...], ln2_b_ref[...]).astype(jnp.bfloat16)
        m = jnp.zeros((M, C), jnp.float32)
        for c0 in range(0, Ch, mlp_chunk):                            # hidden tiling
            t = jnp.dot(h2, w1_ref[:, c0:c0 + mlp_chunk],
                        preferred_element_type=jnp.float32)
            t = t + b1_ref[:, c0:c0 + mlp_chunk]
            t = jnp.where(t > 0, t, _LEAKY_SLOPE * t)                 # LeakyReLU
            m = m + jnp.dot(t.astype(jnp.bfloat16),
                            w2_ref[c0:c0 + mlp_chunk, :],
                            preferred_element_type=jnp.float32)
        y = x1 + m + b2_ref[...]                                      # gain = 1
        o_ref[...] = y.reshape(Bb, N, C).astype(o_ref.dtype)


# ----------------------------- wrapper helpers ------------------------------

def _tensorcore_count():
    """Best-effort TensorCore count (v7x = 2 per chip, v5e/v6e = 1)."""
    try:
        info = pltpu.get_tpu_info()
        for attr in ("num_cores", "core_count", "num_tensorcores",
                     "tensorcore_count"):
            n = getattr(info, attr, None)
            if n:
                return int(n)
    except Exception:
        pass
    return 1


def _vmem_capacity_bytes():
    try:
        cap = int(pltpu.get_tpu_info().vmem_capacity_bytes)
        if cap > 0:
            return cap
    except Exception:
        pass
    return 64 * 1024 * 1024      # conservative default (v7x physical VMEM)


def _pick_head_block(num_heads, head_dim):
    """Largest divisor of num_heads with block width Hb*hd <= 256 (one pass of
    the v6e/v7x MXU) -> wide QKV matmuls / deep proj contraction."""
    best = 1
    for cand in range(1, num_heads + 1):
        if num_heads % cand == 0 and cand * head_dim <= max(256, head_dim):
            best = cand
    return best


def _pick_mlp_chunk(hidden):
    if hidden <= 1024:
        return hidden
    for cand in (1024, 512, 256, 128):
        if hidden % cand == 0:
            return cand
    return hidden


def _vmem_bytes_estimate(Bb, N, C, HD, Ch, ch_blk, n_hb):
    """Rough peak live-VMEM for one grid step (inputs/outputs double-buffered,
    weight stacks, scratches, attention and MLP intermediates)."""
    f32, bf16 = 4, 2
    M = Bb * N
    est = 0
    est += 2 * M * C * f32 * 2                              # x + out blocks (x2 buf)
    est += 2 * M * f32                                      # noise block
    est += 2 * n_hb * (C * 3 * HD + HD * C) * bf16          # attention weight stacks
    est += 2 * (C * Ch + Ch * C) * bf16                     # MLP weights
    est += 2 * (6 * C + Ch) * f32                           # LN / bias vectors
    est += M * C * (bf16 + f32)                             # xf + acc scratches
    est += M * 3 * HD * (f32 + bf16)                        # qkv result + bf16 copy
    est += 2 * Bb * N * N * f32 + Bb * N * N * bf16         # scores / exp / probs
    est += M * HD * (f32 + bf16)                            # head outputs + concat
    est += M * C * f32                                      # proj partial
    est += 3 * M * C * f32 + M * ch_blk * f32               # x1 / h2 / mlp acc / chunk
    return est


def _pick_block_b(B, N, C, HD, Ch, ch_blk, n_hb, budget, min_blocks):
    """Largest Bb dividing B that (a) keeps the live-VMEM estimate under budget
    and (b) keeps the parallel batch axis >= min_blocks steps (multi-TC)."""
    best = 1
    for cand in range(1, B + 1):
        if B % cand:
            continue
        if B // cand < min(min_blocks, B):
            continue
        if _vmem_bytes_estimate(cand, N, C, HD, Ch, ch_blk, n_hb) > budget:
            continue
        best = cand
    return best


def discriminator_block(x, noise, noise_strength, ln1_g, ln1_b, w_qkv, w_proj,
                        b_proj, ln2_g, ln2_b, w1, b1, w2, b2, num_heads):
    B, N, C = x.shape
    assert C % num_heads == 0, "dim must be divisible by num_heads"
    hd = C // num_heads
    Ch = w1.shape[1]
    scale = hd ** (-0.5)
    bf16 = jnp.bfloat16

    Hb = _pick_head_block(num_heads, hd)     # heads per grid step
    n_hb = num_heads // Hb
    HD = Hb * hd
    ch_blk = _pick_mlp_chunk(Ch)

    vmem_cap = _vmem_capacity_bytes()
    Bb = _pick_block_b(B, N, C, HD, Ch, ch_blk, n_hb,
                       budget=int(0.7 * vmem_cap),
                       min_blocks=_tensorcore_count())
    nb = B // Bb
    est = _vmem_bytes_estimate(Bb, N, C, HD, Ch, ch_blk, n_hb)
    vmem_limit = min(int(0.85 * vmem_cap), max(2 * est, 32 * 1024 * 1024))

    # ---- head-block-major weight slabs, built once outside the kernel ------
    def _blockify(w):        # (C, C) with cols ordered (head, hd) -> (n_hb, C, HD)
        return w.reshape(C, n_hb, HD).transpose(1, 0, 2)

    wq_s = _blockify(w_qkv[:, 0 * C:1 * C]) * scale    # fold attention scale
    wk_s = _blockify(w_qkv[:, 1 * C:2 * C])
    wv_s = _blockify(w_qkv[:, 2 * C:3 * C])
    wqkv_s = jnp.concatenate([wq_s, wk_s, wv_s], axis=-1).astype(bf16)  # (n_hb,C,3HD)
    wp_s = w_proj.reshape(n_hb, HD, C).astype(bf16)                     # (n_hb,HD,C)

    kernel = functools.partial(
        _disc_block_kernel, heads_per_block=Hb, head_dim=hd, block_b=Bb,
        seq_len=N, channels=C, mlp_hidden=Ch, mlp_chunk=ch_blk)

    grid_spec = pltpu.PrefetchScalarGridSpec(
        num_scalar_prefetch=1,                     # noise_strength -> SMEM
        grid=(nb, n_hb),                           # (batch blocks, head blocks)
        in_specs=[
            pl.BlockSpec((Bb, N, C), lambda b, h, s: (b, 0, 0)),        # x
            pl.BlockSpec((Bb, N, 1), lambda b, h, s: (b, 0, 0)),        # noise
            pl.BlockSpec((1, C), lambda b, h, s: (0, 0)),               # ln1 gamma
            pl.BlockSpec((1, C), lambda b, h, s: (0, 0)),               # ln1 beta
            # weight stacks: constant index maps -> DMA'd once for the whole
            # grid; the head block is selected in-kernel (dynamic first axis).
            pl.BlockSpec((n_hb, C, 3 * HD), lambda b, h, s: (0, 0, 0)),  # qkv slabs
            pl.BlockSpec((n_hb, HD, C), lambda b, h, s: (0, 0, 0)),      # proj slabs
            pl.BlockSpec((1, C), lambda b, h, s: (0, 0)),               # b_proj
            pl.BlockSpec((1, C), lambda b, h, s: (0, 0)),               # ln2 gamma
            pl.BlockSpec((1, C), lambda b, h, s: (0, 0)),               # ln2 beta
            pl.BlockSpec((C, Ch), lambda b, h, s: (0, 0)),              # mlp w1
            pl.BlockSpec((1, Ch), lambda b, h, s: (0, 0)),              # mlp b1
            pl.BlockSpec((Ch, C), lambda b, h, s: (0, 0)),              # mlp w2
            pl.BlockSpec((1, C), lambda b, h, s: (0, 0)),               # mlp b2
        ],
        out_specs=pl.BlockSpec((Bb, N, C), lambda b, h, s: (b, 0, 0)),
        scratch_shapes=[
            pltpu.VMEM((Bb * N, C), jnp.bfloat16),   # LN1(x)+noise (matmul lhs)
            pltpu.VMEM((Bb * N, C), jnp.float32),    # attention-out accumulator
        ],
    )

    # TODO(synk): optionally take/emit bf16 activations to halve HBM traffic.
    return pl.pallas_call(
        kernel,
        out_shape=jax.ShapeDtypeStruct((B, N, C), jnp.float32),
        grid_spec=grid_spec,
        compiler_params=pltpu.CompilerParams(
            dimension_semantics=("parallel", "arbitrary"),
            vmem_limit_bytes=vmem_limit),
    )(noise_strength, x, noise, ln1_g, ln1_b, wqkv_s, wp_s, b_proj,
      ln2_g, ln2_b, w1.astype(bf16), b1, w2.astype(bf16), b2)


def _reference(x, noise, noise_strength, ln1_g, ln1_b, w_qkv, w_proj, b_proj,
               ln2_g, ln2_b, w1, b1, w2, b2, num_heads):
    """Plain-JAX f32 transcription of the PyTorch Discriminator_Block."""
    B, N, C = x.shape
    hd = C // num_heads
    scale = hd ** (-0.5)

    def ln(t, g, b):
        mu = t.mean(-1, keepdims=True)
        var = ((t - mu) ** 2).mean(-1, keepdims=True)
        return (t - mu) / jnp.sqrt(var + _LN_EPS) * g + b

    h1 = ln(x, ln1_g, ln1_b)
    xn = h1 + noise * noise_strength[0]
    qkv = xn @ w_qkv                                                   # (B, N, 3C)
    qkv = qkv.reshape(B, N, 3, num_heads, hd).transpose(2, 0, 3, 1, 4)
    q, k, v = qkv[0], qkv[1], qkv[2]                                   # (B, H, N, hd)
    attn = jnp.einsum('bhnd,bhmd->bhnm', q, k) * scale
    attn = jax.nn.softmax(attn, axis=-1)
    o = jnp.einsum('bhnm,bhmd->bhnd', attn, v)
    o = o.transpose(0, 2, 1, 3).reshape(B, N, C)
    a = o @ w_proj + b_proj
    x1 = x + a                                                         # gain = 1
    h2 = ln(x1, ln2_g, ln2_b)
    t = h2 @ w1 + b1
    t = jnp.where(t > 0, t, _LEAKY_SLOPE * t)
    m = t @ w2 + b2
    return x1 + m


if __name__ == "__main__":
    # Small shapes consistent with the module: C divisible by num_heads=8,
    # mlp_hidden = 4 * C.
    B, N, C = 2, 8, 32
    num_heads = 8
    mlp_hidden = 4 * C

    key = jax.random.PRNGKey(0)
    (kx, kn, kq, kp, kb, k1g, k1b, k2g, k2b,
     kw1, kb1, kw2, kb2) = jax.random.split(key, 13)

    x = jax.random.normal(kx, (B, N, C), dtype=jnp.float32)
    # torch.randn([B, N, 1]) from the module forward, passed in explicitly so
    # the kernel and the reference see the same noise.
    noise = jax.random.normal(kn, (B, N, 1), dtype=jnp.float32)
    # noise_strength_1 inits to 0 in the module; use a nonzero value so the
    # noise path is actually exercised.
    noise_strength = jnp.full((1,), 0.1, dtype=jnp.float32)

    ln1_g = 1.0 + 0.1 * jax.random.normal(k1g, (1, C), dtype=jnp.float32)
    ln1_b = 0.1 * jax.random.normal(k1b, (1, C), dtype=jnp.float32)
    ln2_g = 1.0 + 0.1 * jax.random.normal(k2g, (1, C), dtype=jnp.float32)
    ln2_b = 0.1 * jax.random.normal(k2b, (1, C), dtype=jnp.float32)

    # Weights stored as (in, out): y = x @ W  (== torch's x @ W.T).
    w_qkv = 0.05 * jax.random.normal(kq, (C, 3 * C), dtype=jnp.float32)
    w_proj = 0.05 * jax.random.normal(kp, (C, C), dtype=jnp.float32)
    b_proj = 0.05 * jax.random.normal(kb, (1, C), dtype=jnp.float32)

    w1 = 0.05 * jax.random.normal(kw1, (C, mlp_hidden), dtype=jnp.float32)
    b1 = 0.05 * jax.random.normal(kb1, (1, mlp_hidden), dtype=jnp.float32)
    w2 = 0.05 * jax.random.normal(kw2, (mlp_hidden, C), dtype=jnp.float32)
    b2 = 0.05 * jax.random.normal(kb2, (1, C), dtype=jnp.float32)

    out = discriminator_block(x, noise, noise_strength, ln1_g, ln1_b,
                              w_qkv, w_proj, b_proj, ln2_g, ln2_b,
                              w1, b1, w2, b2, num_heads)
    out = jax.block_until_ready(out)

    ref = _reference(x, noise, noise_strength, ln1_g, ln1_b, w_qkv, w_proj,
                     b_proj, ln2_g, ln2_b, w1, b1, w2, b2, num_heads)
    # bf16 MXU operands + approx reciprocal -> compare with loosened tolerance.
    if not bool(jnp.allclose(out, ref, atol=2e-2, rtol=2e-2)):
        max_err = float(jnp.max(jnp.abs(out - ref)))
        raise AssertionError(
            f"Pallas kernel does not match reference (max abs err {max_err})")

    print("KERNEL_OK")
</pallas_src>

<mosaic_0001>
module attributes {stable_mosaic.version = 11 : i64} {
  func.func @_disc_block_kernel(%arg0: i32, %arg1: i32, %arg2: memref<1xf32, #tpu.memory_space<smem>>, %arg3: memref<2x8x32xf32, #tpu.memory_space<vmem>>, %arg4: memref<2x8x1xf32, #tpu.memory_space<vmem>>, %arg5: memref<1x32xf32, #tpu.memory_space<vmem>>, %arg6: memref<1x32xf32, #tpu.memory_space<vmem>>, %arg7: memref<1x32x96xbf16, #tpu.memory_space<vmem>>, %arg8: memref<1x32x32xbf16, #tpu.memory_space<vmem>>, %arg9: memref<1x32xf32, #tpu.memory_space<vmem>>, %arg10: memref<1x32xf32, #tpu.memory_space<vmem>>, %arg11: memref<1x32xf32, #tpu.memory_space<vmem>>, %arg12: memref<32x128xbf16, #tpu.memory_space<vmem>>, %arg13: memref<1x128xf32, #tpu.memory_space<vmem>>, %arg14: memref<128x32xbf16, #tpu.memory_space<vmem>>, %arg15: memref<1x32xf32, #tpu.memory_space<vmem>>, %arg16: memref<2x8x32xf32, #tpu.memory_space<vmem>>, %arg17: memref<16x32xbf16, #tpu.memory_space<vmem>>, %arg18: memref<16x32xf32, #tpu.memory_space<vmem>>) attributes {dimension_semantics = [#tpu.dimension_semantics<parallel>, #tpu.dimension_semantics<arbitrary>], iteration_bounds = array<i64: 1, 1>, scalar_prefetch = 1 : i64, scratch_operands = 2 : i64, tpu.core_type = #tpu.core_type<tc>, window_params = [{transform_indices = @transform_0, window_bounds = array<i64: 2, 8, 32>}, {transform_indices = @transform_1, window_bounds = array<i64: 2, 8, 1>}, {pipeline_mode = #tpu.pipeline_mode<synchronous>, transform_indices = @transform_2, window_bounds = array<i64: 1, 32>}, {pipeline_mode = #tpu.pipeline_mode<synchronous>, transform_indices = @transform_3, window_bounds = array<i64: 1, 32>}, {pipeline_mode = #tpu.pipeline_mode<synchronous>, transform_indices = @transform_4, window_bounds = array<i64: 1, 32, 96>}, {pipeline_mode = #tpu.pipeline_mode<synchronous>, transform_indices = @transform_5, window_bounds = array<i64: 1, 32, 32>}, {pipeline_mode = #tpu.pipeline_mode<synchronous>, transform_indices = @transform_6, window_bounds = array<i64: 1, 32>}, {pipeline_mode = #tpu.pipeline_mode<synchronous>, transform_indices = @transform_7, window_bounds = array<i64: 1, 32>}, {pipeline_mode = #tpu.pipeline_mode<synchronous>, transform_indices = @transform_8, window_bounds = array<i64: 1, 32>}, {pipeline_mode = #tpu.pipeline_mode<synchronous>, transform_indices = @transform_9, window_bounds = array<i64: 32, 128>}, {pipeline_mode = #tpu.pipeline_mode<synchronous>, transform_indices = @transform_10, window_bounds = array<i64: 1, 128>}, {pipeline_mode = #tpu.pipeline_mode<synchronous>, transform_indices = @transform_11, window_bounds = array<i64: 128, 32>}, {pipeline_mode = #tpu.pipeline_mode<synchronous>, transform_indices = @transform_12, window_bounds = array<i64: 1, 32>}, {transform_indices = @transform_13, window_bounds = array<i64: 2, 8, 32>}]} {
    %c0_i32 = arith.constant 0 : i32
    %0 = arith.cmpi eq, %arg1, %c0_i32 : i32
    %1 = arith.extui %0 : i1 to i32
    %c0_i32_0 = arith.constant 0 : i32
    %2 = arith.cmpi ne, %1, %c0_i32_0 : i32
    scf.if %2 {
      %c0_45 = arith.constant 0 : index
      %c0_46 = arith.constant 0 : index
      %c0_47 = arith.constant 0 : index
      %174 = vector.load %arg3[%c0_45, %c0_46, %c0_47] : memref<2x8x32xf32, #tpu.memory_space<vmem>>, vector<2x8x32xf32>
      %175 = vector.shape_cast %174 : vector<2x8x32xf32> to vector<16x32xf32>
      %c0_48 = arith.constant 0 : index
      %c0_49 = arith.constant 0 : index
      %176 = vector.load %arg5[%c0_48, %c0_49] : memref<1x32xf32, #tpu.memory_space<vmem>>, vector<1x32xf32>
      %c0_50 = arith.constant 0 : index
      %c0_51 = arith.constant 0 : index
      %177 = vector.load %arg6[%c0_50, %c0_51] : memref<1x32xf32, #tpu.memory_space<vmem>>, vector<1x32xf32>
      %cst_52 = arith.constant dense<0.000000e+00> : vector<16xf32>
      %178 = vector.multi_reduction <add>, %175, %cst_52 [1] : vector<16x32xf32> to vector<16xf32>
      %179 = vector.shape_cast %178 : vector<16xf32> to vector<16x1xf32>
      %cst_53 = arith.constant 3.200000e+01 : f32
      %180 = vector.broadcast %cst_53 : f32 to vector<16x1xf32>
      %181 = arith.divf %179, %180 : vector<16x1xf32>
      %182 = vector.broadcast %181 : vector<16x1xf32> to vector<16x32xf32>
      %183 = arith.subf %175, %182 : vector<16x32xf32>
      %184 = arith.mulf %183, %183 : vector<16x32xf32>
      %cst_54 = arith.constant dense<0.000000e+00> : vector<16xf32>
      %185 = vector.multi_reduction <add>, %184, %cst_54 [1] : vector<16x32xf32> to vector<16xf32>
      %186 = vector.shape_cast %185 : vector<16xf32> to vector<16x1xf32>
      %cst_55 = arith.constant 3.200000e+01 : f32
      %187 = vector.broadcast %cst_55 : f32 to vector<16x1xf32>
      %188 = arith.divf %186, %187 : vector<16x1xf32>
      %cst_56 = arith.constant 9.99999974E-6 : f32
      %189 = vector.broadcast %cst_56 : f32 to vector<16x1xf32>
      %190 = arith.addf %188, %189 : vector<16x1xf32>
      %191 = math.rsqrt %190 : vector<16x1xf32>
      %192 = vector.broadcast %191 : vector<16x1xf32> to vector<16x32xf32>
      %193 = arith.mulf %183, %192 : vector<16x32xf32>
      %194 = vector.broadcast %176 : vector<1x32xf32> to vector<16x32xf32>
      %195 = arith.mulf %193, %194 : vector<16x32xf32>
      %196 = vector.broadcast %177 : vector<1x32xf32> to vector<16x32xf32>
      %197 = arith.addf %195, %196 : vector<16x32xf32>
      %198 = vector.shape_cast %197 : vector<16x32xf32> to vector<2x8x32xf32>
      %c0_57 = arith.constant 0 : index
      %c0_58 = arith.constant 0 : index
      %c0_59 = arith.constant 0 : index
      %199 = vector.load %arg4[%c0_57, %c0_58, %c0_59] : memref<2x8x1xf32, #tpu.memory_space<vmem>>, vector<2x8x1xf32>
      %c0_60 = arith.constant 0 : index
      %200 = memref.load %arg2[%c0_60] : memref<1xf32, #tpu.memory_space<smem>>
      %201 = vector.broadcast %200 : f32 to vector<2x8x1xf32>
      %202 = arith.mulf %199, %201 : vector<2x8x1xf32>
      %203 = vector.broadcast %202 : vector<2x8x1xf32> to vector<2x8x32xf32>
      %204 = arith.addf %198, %203 : vector<2x8x32xf32>
      %205 = vector.shape_cast %204 : vector<2x8x32xf32> to vector<16x32xf32>
      %206 = arith.truncf %205 : vector<16x32xf32> to vector<16x32xbf16>
      %c0_61 = arith.constant 0 : index
      %c0_62 = arith.constant 0 : index
      %207 = vector.load %arg17[%c0_61, %c0_62] : memref<16x32xbf16, #tpu.memory_space<vmem>>, vector<16x32xbf16>
      tpu.vector_store %arg17[%c0_61, %c0_62], %206 {strides = array<i32>} : memref<16x32xbf16, #tpu.memory_space<vmem>>, vector<16x32xbf16>,
      %c0_63 = arith.constant 0 : index
      %c0_64 = arith.constant 0 : index
      %208 = vector.load %arg9[%c0_63, %c0_64] : memref<1x32xf32, #tpu.memory_space<vmem>>, vector<1x32xf32>
      %209 = vector.shape_cast %208 : vector<1x32xf32> to vector<1x32xf32>
      %210 = vector.broadcast %209 : vector<1x32xf32> to vector<16x32xf32>
      %c0_65 = arith.constant 0 : index
      %c0_66 = arith.constant 0 : index
      %211 = vector.load %arg18[%c0_65, %c0_66] : memref<16x32xf32, #tpu.memory_space<vmem>>, vector<16x32xf32>
      tpu.vector_store %arg18[%c0_65, %c0_66], %210 {strides = array<i32>} : memref<16x32xf32, #tpu.memory_space<vmem>>, vector<16x32xf32>,
    } else {
    }
    %c0 = arith.constant 0 : index
    %c0_1 = arith.constant 0 : index
    %3 = vector.load %arg17[%c0, %c0_1] : memref<16x32xbf16, #tpu.memory_space<vmem>>, vector<16x32xbf16>
    %4 = arith.index_cast %arg1 : i32 to index
    %c0_2 = arith.constant 0 : index
    %c0_3 = arith.constant 0 : index
    %5 = vector.load %arg7[%4, %c0_2, %c0_3] : memref<1x32x96xbf16, #tpu.memory_space<vmem>>, vector<1x32x96xbf16>
    %6 = vector.shape_cast %5 : vector<1x32x96xbf16> to vector<32x96xbf16>
    %cst = arith.constant dense<0.000000e+00> : vector<16x96xf32>
    %7 = tpu.matmul %3, %6, %cst {dimension_numbers = #tpu.dot_dimension_numbers<[1], [0], [0], [1], [0, 0, 1, 1], [], []>} : vector<16x32xbf16>, vector<32x96xbf16>, vector<16x96xf32> -> vector<16x96xf32>
    %8 = arith.truncf %7 : vector<16x96xf32> to vector<16x96xbf16>
    %9 = vector.extract_strided_slice %8 {offsets = [0, 0], sizes = [16, 4], strides = [1, 1]} : vector<16x96xbf16> to vector<16x4xbf16>
    %10 = vector.shape_cast %9 : vector<16x4xbf16> to vector<2x8x4xbf16>
    %11 = vector.extract_strided_slice %8 {offsets = [0, 32], sizes = [16, 4], strides = [1, 1]} : vector<16x96xbf16> to vector<16x4xbf16>
    %12 = vector.shape_cast %11 : vector<16x4xbf16> to vector<2x8x4xbf16>
    %13 = vector.extract_strided_slice %8 {offsets = [0, 64], sizes = [16, 4], strides = [1, 1]} : vector<16x96xbf16> to vector<16x4xbf16>
    %14 = vector.shape_cast %13 : vector<16x4xbf16> to vector<2x8x4xbf16>
    "tpu.trace_start"() <{level = 10 : i32, message = "bnd,bmd->bnm"}> : () -> ()
    %cst_4 = arith.constant dense<0.000000e+00> : vector<2x8x8xf32>
    %15 = tpu.matmul %10, %12, %cst_4 {dimension_numbers = #tpu.dot_dimension_numbers<[2], [2], [1], [1], [0, 0, 0, 1, 1, 1], [0], [0]>} : vector<2x8x4xbf16>, vector<2x8x4xbf16>, vector<2x8x8xf32> -> vector<2x8x8xf32>
    "tpu.trace_stop"() : () -> ()
    %cst_5 = arith.constant dense<0xFF800000> : vector<2x8xf32>
    %16 = vector.multi_reduction <maximumf>, %15, %cst_5 [2] : vector<2x8x8xf32> to vector<2x8xf32>
    %17 = vector.shape_cast %16 : vector<2x8xf32> to vector<2x8x1xf32>
    %18 = vector.broadcast %17 : vector<2x8x1xf32> to vector<2x8x8xf32>
    %19 = arith.subf %15, %18 : vector<2x8x8xf32>
    %20 = math.exp %19 : vector<2x8x8xf32>
    %cst_6 = arith.constant dense<0.000000e+00> : vector<2x8xf32>
    %21 = vector.multi_reduction <add>, %20, %cst_6 [2] : vector<2x8x8xf32> to vector<2x8xf32>
    %22 = vector.shape_cast %21 : vector<2x8xf32> to vector<2x8x1xf32>
    %23 = tpu.reciprocal %22 {approx = true} : vector<2x8x1xf32> -> vector<2x8x1xf32>
    %24 = vector.broadcast %23 : vector<2x8x1xf32> to vector<2x8x8xf32>
    %25 = arith.mulf %20, %24 : vector<2x8x8xf32>
    %26 = arith.truncf %25 : vector<2x8x8xf32> to vector<2x8x8xbf16>
    "tpu.trace_start"() <{level = 10 : i32, message = "bnm,bmd->bnd"}> : () -> ()
    %cst_7 = arith.constant dense<0.000000e+00> : vector<2x8x4xf32>
    %27 = tpu.matmul %26, %14, %cst_7 {dimension_numbers = #tpu.dot_dimension_numbers<[2], [1], [1], [2], [0, 0, 0, 1, 1, 2], [0], [0]>} : vector<2x8x8xbf16>, vector<2x8x4xbf16>, vector<2x8x4xf32> -> vector<2x8x4xf32>
    "tpu.trace_stop"() : () -> ()
    %28 = vector.extract_strided_slice %8 {offsets = [0, 4], sizes = [16, 4], strides = [1, 1]} : vector<16x96xbf16> to vector<16x4xbf16>
    %29 = vector.shape_cast %28 : vector<16x4xbf16> to vector<2x8x4xbf16>
    %30 = vector.extract_strided_slice %8 {offsets = [0, 36], sizes = [16, 4], strides = [1, 1]} : vector<16x96xbf16> to vector<16x4xbf16>
    %31 = vector.shape_cast %30 : vector<16x4xbf16> to vector<2x8x4xbf16>
    %32 = vector.extract_strided_slice %8 {offsets = [0, 68], sizes = [16, 4], strides = [1, 1]} : vector<16x96xbf16> to vector<16x4xbf16>
    %33 = vector.shape_cast %32 : vector<16x4xbf16> to vector<2x8x4xbf16>
    "tpu.trace_start"() <{level = 10 : i32, message = "bnd,bmd->bnm"}> : () -> ()
    %cst_8 = arith.constant dense<0.000000e+00> : vector<2x8x8xf32>
    %34 = tpu.matmul %29, %31, %cst_8 {dimension_numbers = #tpu.dot_dimension_numbers<[2], [2], [1], [1], [0, 0, 0, 1, 1, 1], [0], [0]>} : vector<2x8x4xbf16>, vector<2x8x4xbf16>, vector<2x8x8xf32> -> vector<2x8x8xf32>
    "tpu.trace_stop"() : () -> ()
    %cst_9 = arith.constant dense<0xFF800000> : vector<2x8xf32>
    %35 = vector.multi_reduction <maximumf>, %34, %cst_9 [2] : vector<2x8x8xf32> to vector<2x8xf32>
    %36 = vector.shape_cast %35 : vector<2x8xf32> to vector<2x8x1xf32>
    %37 = vector.broadcast %36 : vector<2x8x1xf32> to vector<2x8x8xf32>
    %38 = arith.subf %34, %37 : vector<2x8x8xf32>
    %39 = math.exp %38 : vector<2x8x8xf32>
    %cst_10 = arith.constant dense<0.000000e+00> : vector<2x8xf32>
    %40 = vector.multi_reduction <add>, %39, %cst_10 [2] : vector<2x8x8xf32> to vector<2x8xf32>
    %41 = vector.shape_cast %40 : vector<2x8xf32> to vector<2x8x1xf32>
    %42 = tpu.reciprocal %41 {approx = true} : vector<2x8x1xf32> -> vector<2x8x1xf32>
    %43 = vector.broadcast %42 : vector<2x8x1xf32> to vector<2x8x8xf32>
    %44 = arith.mulf %39, %43 : vector<2x8x8xf32>
    %45 = arith.truncf %44 : vector<2x8x8xf32> to vector<2x8x8xbf16>
    "tpu.trace_start"() <{level = 10 : i32, message = "bnm,bmd->bnd"}> : () -> ()
    %cst_11 = arith.constant dense<0.000000e+00> : vector<2x8x4xf32>
    %46 = tpu.matmul %45, %33, %cst_11 {dimension_numbers = #tpu.dot_dimension_numbers<[2], [1], [1], [2], [0, 0, 0, 1, 1, 2], [0], [0]>} : vector<2x8x8xbf16>, vector<2x8x4xbf16>, vector<2x8x4xf32> -> vector<2x8x4xf32>
    "tpu.trace_stop"() : () -> ()
    %47 = vector.extract_strided_slice %8 {offsets = [0, 8], sizes = [16, 4], strides = [1, 1]} : vector<16x96xbf16> to vector<16x4xbf16>
    %48 = vector.shape_cast %47 : vector<16x4xbf16> to vector<2x8x4xbf16>
    %49 = vector.extract_strided_slice %8 {offsets = [0, 40], sizes = [16, 4], strides = [1, 1]} : vector<16x96xbf16> to vector<16x4xbf16>
    %50 = vector.shape_cast %49 : vector<16x4xbf16> to vector<2x8x4xbf16>
    %51 = vector.extract_strided_slice %8 {offsets = [0, 72], sizes = [16, 4], strides = [1, 1]} : vector<16x96xbf16> to vector<16x4xbf16>
    %52 = vector.shape_cast %51 : vector<16x4xbf16> to vector<2x8x4xbf16>
    "tpu.trace_start"() <{level = 10 : i32, message = "bnd,bmd->bnm"}> : () -> ()
    %cst_12 = arith.constant dense<0.000000e+00> : vector<2x8x8xf32>
    %53 = tpu.matmul %48, %50, %cst_12 {dimension_numbers = #tpu.dot_dimension_numbers<[2], [2], [1], [1], [0, 0, 0, 1, 1, 1], [0], [0]>} : vector<2x8x4xbf16>, vector<2x8x4xbf16>, vector<2x8x8xf32> -> vector<2x8x8xf32>
    "tpu.trace_stop"() : () -> ()
    %cst_13 = arith.constant dense<0xFF800000> : vector<2x8xf32>
    %54 = vector.multi_reduction <maximumf>, %53, %cst_13 [2] : vector<2x8x8xf32> to vector<2x8xf32>
    %55 = vector.shape_cast %54 : vector<2x8xf32> to vector<2x8x1xf32>
    %56 = vector.broadcast %55 : vector<2x8x1xf32> to vector<2x8x8xf32>
    %57 = arith.subf %53, %56 : vector<2x8x8xf32>
    %58 = math.exp %57 : vector<2x8x8xf32>
    %cst_14 = arith.constant dense<0.000000e+00> : vector<2x8xf32>
    %59 = vector.multi_reduction <add>, %58, %cst_14 [2] : vector<2x8x8xf32> to vector<2x8xf32>
    %60 = vector.shape_cast %59 : vector<2x8xf32> to vector<2x8x1xf32>
    %61 = tpu.reciprocal %60 {approx = true} : vector<2x8x1xf32> -> vector<2x8x1xf32>
    %62 = vector.broadcast %61 : vector<2x8x1xf32> to vector<2x8x8xf32>
    %63 = arith.mulf %58, %62 : vector<2x8x8xf32>
    %64 = arith.truncf %63 : vector<2x8x8xf32> to vector<2x8x8xbf16>
    "tpu.trace_start"() <{level = 10 : i32, message = "bnm,bmd->bnd"}> : () -> ()
    %cst_15 = arith.constant dense<0.000000e+00> : vector<2x8x4xf32>
    %65 = tpu.matmul %64, %52, %cst_15 {dimension_numbers = #tpu.dot_dimension_numbers<[2], [1], [1], [2], [0, 0, 0, 1, 1, 2], [0], [0]>} : vector<2x8x8xbf16>, vector<2x8x4xbf16>, vector<2x8x4xf32> -> vector<2x8x4xf32>
    "tpu.trace_stop"() : () -> ()
    %66 = vector.extract_strided_slice %8 {offsets = [0, 12], sizes = [16, 4], strides = [1, 1]} : vector<16x96xbf16> to vector<16x4xbf16>
    %67 = vector.shape_cast %66 : vector<16x4xbf16> to vector<2x8x4xbf16>
    %68 = vector.extract_strided_slice %8 {offsets = [0, 44], sizes = [16, 4], strides = [1, 1]} : vector<16x96xbf16> to vector<16x4xbf16>
    %69 = vector.shape_cast %68 : vector<16x4xbf16> to vector<2x8x4xbf16>
    %70 = vector.extract_strided_slice %8 {offsets = [0, 76], sizes = [16, 4], strides = [1, 1]} : vector<16x96xbf16> to vector<16x4xbf16>
    %71 = vector.shape_cast %70 : vector<16x4xbf16> to vector<2x8x4xbf16>
    "tpu.trace_start"() <{level = 10 : i32, message = "bnd,bmd->bnm"}> : () -> ()
    %cst_16 = arith.constant dense<0.000000e+00> : vector<2x8x8xf32>
    %72 = tpu.matmul %67, %69, %cst_16 {dimension_numbers = #tpu.dot_dimension_numbers<[2], [2], [1], [1], [0, 0, 0, 1, 1, 1], [0], [0]>} : vector<2x8x4xbf16>, vector<2x8x4xbf16>, vector<2x8x8xf32> -> vector<2x8x8xf32>
    "tpu.trace_stop"() : () -> ()
    %cst_17 = arith.constant dense<0xFF800000> : vector<2x8xf32>
    %73 = vector.multi_reduction <maximumf>, %72, %cst_17 [2] : vector<2x8x8xf32> to vector<2x8xf32>
    %74 = vector.shape_cast %73 : vector<2x8xf32> to vector<2x8x1xf32>
    %75 = vector.broadcast %74 : vector<2x8x1xf32> to vector<2x8x8xf32>
    %76 = arith.subf %72, %75 : vector<2x8x8xf32>
    %77 = math.exp %76 : vector<2x8x8xf32>
    %cst_18 = arith.constant dense<0.000000e+00> : vector<2x8xf32>
    %78 = vector.multi_reduction <add>, %77, %cst_18 [2] : vector<2x8x8xf32> to vector<2x8xf32>
    %79 = vector.shape_cast %78 : vector<2x8xf32> to vector<2x8x1xf32>
    %80 = tpu.reciprocal %79 {approx = true} : vector<2x8x1xf32> -> vector<2x8x1xf32>
    %81 = vector.broadcast %80 : vector<2x8x1xf32> to vector<2x8x8xf32>
    %82 = arith.mulf %77, %81 : vector<2x8x8xf32>
    %83 = arith.truncf %82 : vector<2x8x8xf32> to vector<2x8x8xbf16>
    "tpu.trace_start"() <{level = 10 : i32, message = "bnm,bmd->bnd"}> : () -> ()
    %cst_19 = arith.constant dense<0.000000e+00> : vector<2x8x4xf32>
    %84 = tpu.matmul %83, %71, %cst_19 {dimension_numbers = #tpu.dot_dimension_numbers<[2], [1], [1], [2], [0, 0, 0, 1, 1, 2], [0], [0]>} : vector<2x8x8xbf16>, vector<2x8x4xbf16>, vector<2x8x4xf32> -> vector<2x8x4xf32>
    "tpu.trace_stop"() : () -> ()
    %85 = vector.extract_strided_slice %8 {offsets = [0, 16], sizes = [16, 4], strides = [1, 1]} : vector<16x96xbf16> to vector<16x4xbf16>
    %86 = vector.shape_cast %85 : vector<16x4xbf16> to vector<2x8x4xbf16>
    %87 = vector.extract_strided_slice %8 {offsets = [0, 48], sizes = [16, 4], strides = [1, 1]} : vector<16x96xbf16> to vector<16x4xbf16>
    %88 = vector.shape_cast %87 : vector<16x4xbf16> to vector<2x8x4xbf16>
    %89 = vector.extract_strided_slice %8 {offsets = [0, 80], sizes = [16, 4], strides = [1, 1]} : vector<16x96xbf16> to vector<16x4xbf16>
    %90 = vector.shape_cast %89 : vector<16x4xbf16> to vector<2x8x4xbf16>
    "tpu.trace_start"() <{level = 10 : i32, message = "bnd,bmd->bnm"}> : () -> ()
    %cst_20 = arith.constant dense<0.000000e+00> : vector<2x8x8xf32>
    %91 = tpu.matmul %86, %88, %cst_20 {dimension_numbers = #tpu.dot_dimension_numbers<[2], [2], [1], [1], [0, 0, 0, 1, 1, 1], [0], [0]>} : vector<2x8x4xbf16>, vector<2x8x4xbf16>, vector<2x8x8xf32> -> vector<2x8x8xf32>
    "tpu.trace_stop"() : () -> ()
    %cst_21 = arith.constant dense<0xFF800000> : vector<2x8xf32>
    %92 = vector.multi_reduction <maximumf>, %91, %cst_21 [2] : vector<2x8x8xf32> to vector<2x8xf32>
    %93 = vector.shape_cast %92 : vector<2x8xf32> to vector<2x8x1xf32>
    %94 = vector.broadcast %93 : vector<2x8x1xf32> to vector<2x8x8xf32>
    %95 = arith.subf %91, %94 : vector<2x8x8xf32>
    %96 = math.exp %95 : vector<2x8x8xf32>
    %cst_22 = arith.constant dense<0.000000e+00> : vector<2x8xf32>
    %97 = vector.multi_reduction <add>, %96, %cst_22 [2] : vector<2x8x8xf32> to vector<2x8xf32>
    %98 = vector.shape_cast %97 : vector<2x8xf32> to vector<2x8x1xf32>
    %99 = tpu.reciprocal %98 {approx = true} : vector<2x8x1xf32> -> vector<2x8x1xf32>
    %100 = vector.broadcast %99 : vector<2x8x1xf32> to vector<2x8x8xf32>
    %101 = arith.mulf %96, %100 : vector<2x8x8xf32>
    %102 = arith.truncf %101 : vector<2x8x8xf32> to vector<2x8x8xbf16>
    "tpu.trace_start"() <{level = 10 : i32, message = "bnm,bmd->bnd"}> : () -> ()
    %cst_23 = arith.constant dense<0.000000e+00> : vector<2x8x4xf32>
    %103 = tpu.matmul %102, %90, %cst_23 {dimension_numbers = #tpu.dot_dimension_numbers<[2], [1], [1], [2], [0, 0, 0, 1, 1, 2], [0], [0]>} : vector<2x8x8xbf16>, vector<2x8x4xbf16>, vector<2x8x4xf32> -> vector<2x8x4xf32>
    "tpu.trace_stop"() : () -> ()
    %104 = vector.extract_strided_slice %8 {offsets = [0, 20], sizes = [16, 4], strides = [1, 1]} : vector<16x96xbf16> to vector<16x4xbf16>
    %105 = vector.shape_cast %104 : vector<16x4xbf16> to vector<2x8x4xbf16>
    %106 = vector.extract_strided_slice %8 {offsets = [0, 52], sizes = [16, 4], strides = [1, 1]} : vector<16x96xbf16> to vector<16x4xbf16>
    %107 = vector.shape_cast %106 : vector<16x4xbf16> to vector<2x8x4xbf16>
    %108 = vector.extract_strided_slice %8 {offsets = [0, 84], sizes = [16, 4], strides = [1, 1]} : vector<16x96xbf16> to vector<16x4xbf16>
    %109 = vector.shape_cast %108 : vector<16x4xbf16> to vector<2x8x4xbf16>
    "tpu.trace_start"() <{level = 10 : i32, message = "bnd,bmd->bnm"}> : () -> ()
    %cst_24 = arith.constant dense<0.000000e+00> : vector<2x8x8xf32>
    %110 = tpu.matmul %105, %107, %cst_24 {dimension_numbers = #tpu.dot_dimension_numbers<[2], [2], [1], [1], [0, 0, 0, 1, 1, 1], [0], [0]>} : vector<2x8x4xbf16>, vector<2x8x4xbf16>, vector<2x8x8xf32> -> vector<2x8x8xf32>
    "tpu.trace_stop"() : () -> ()
    %cst_25 = arith.constant dense<0xFF800000> : vector<2x8xf32>
    %111 = vector.multi_reduction <maximumf>, %110, %cst_25 [2] : vector<2x8x8xf32> to vector<2x8xf32>
    %112 = vector.shape_cast %111 : vector<2x8xf32> to vector<2x8x1xf32>
    %113 = vector.broadcast %112 : vector<2x8x1xf32> to vector<2x8x8xf32>
    %114 = arith.subf %110, %113 : vector<2x8x8xf32>
    %115 = math.exp %114 : vector<2x8x8xf32>
    %cst_26 = arith.constant dense<0.000000e+00> : vector<2x8xf32>
    %116 = vector.multi_reduction <add>, %115, %cst_26 [2] : vector<2x8x8xf32> to vector<2x8xf32>
    %117 = vector.shape_cast %116 : vector<2x8xf32> to vector<2x8x1xf32>
    %118 = tpu.reciprocal %117 {approx = true} : vector<2x8x1xf32> -> vector<2x8x1xf32>
    %119 = vector.broadcast %118 : vector<2x8x1xf32> to vector<2x8x8xf32>
    %120 = arith.mulf %115, %119 : vector<2x8x8xf32>
    %121 = arith.truncf %120 : vector<2x8x8xf32> to vector<2x8x8xbf16>
    "tpu.trace_start"() <{level = 10 : i32, message = "bnm,bmd->bnd"}> : () -> ()
    %cst_27 = arith.constant dense<0.000000e+00> : vector<2x8x4xf32>
    %122 = tpu.matmul %121, %109, %cst_27 {dimension_numbers = #tpu.dot_dimension_numbers<[2], [1], [1], [2], [0, 0, 0, 1, 1, 2], [0], [0]>} : vector<2x8x8xbf16>, vector<2x8x4xbf16>, vector<2x8x4xf32> -> vector<2x8x4xf32>
    "tpu.trace_stop"() : () -> ()
    %123 = vector.extract_strided_slice %8 {offsets = [0, 24], sizes = [16, 4], strides = [1, 1]} : vector<16x96xbf16> to vector<16x4xbf16>
    %124 = vector.shape_cast %123 : vector<16x4xbf16> to vector<2x8x4xbf16>
    %125 = vector.extract_strided_slice %8 {offsets = [0, 56], sizes = [16, 4], strides = [1, 1]} : vector<16x96xbf16> to vector<16x4xbf16>
    %126 = vector.shape_cast %125 : vector<16x4xbf16> to vector<2x8x4xbf16>
    %127 = vector.extract_strided_slice %8 {offsets = [0, 88], sizes = [16, 4], strides = [1, 1]} : vector<16x96xbf16> to vector<16x4xbf16>
    %128 = vector.shape_cast %127 : vector<16x4xbf16> to vector<2x8x4xbf16>
    "tpu.trace_start"() <{level = 10 : i32, message = "bnd,bmd->bnm"}> : () -> ()
    %cst_28 = arith.constant dense<0.000000e+00> : vector<2x8x8xf32>
    %129 = tpu.matmul %124, %126, %cst_28 {dimension_numbers = #tpu.dot_dimension_numbers<[2], [2], [1], [1], [0, 0, 0, 1, 1, 1], [0], [0]>} : vector<2x8x4xbf16>, vector<2x8x4xbf16>, vector<2x8x8xf32> -> vector<2x8x8xf32>
    "tpu.trace_stop"() : () -> ()
    %cst_29 = arith.constant dense<0xFF800000> : vector<2x8xf32>
    %130 = vector.multi_reduction <maximumf>, %129, %cst_29 [2] : vector<2x8x8xf32> to vector<2x8xf32>
    %131 = vector.shape_cast %130 : vector<2x8xf32> to vector<2x8x1xf32>
    %132 = vector.broadcast %131 : vector<2x8x1xf32> to vector<2x8x8xf32>
    %133 = arith.subf %129, %132 : vector<2x8x8xf32>
    %134 = math.exp %133 : vector<2x8x8xf32>
    %cst_30 = arith.constant dense<0.000000e+00> : vector<2x8xf32>
    %135 = vector.multi_reduction <add>, %134, %cst_30 [2] : vector<2x8x8xf32> to vector<2x8xf32>
    %136 = vector.shape_cast %135 : vector<2x8xf32> to vector<2x8x1xf32>
    %137 = tpu.reciprocal %136 {approx = true} : vector<2x8x1xf32> -> vector<2x8x1xf32>
    %138 = vector.broadcast %137 : vector<2x8x1xf32> to vector<2x8x8xf32>
    %139 = arith.mulf %134, %138 : vector<2x8x8xf32>
    %140 = arith.truncf %139 : vector<2x8x8xf32> to vector<2x8x8xbf16>
    "tpu.trace_start"() <{level = 10 : i32, message = "bnm,bmd->bnd"}> : () -> ()
    %cst_31 = arith.constant dense<0.000000e+00> : vector<2x8x4xf32>
    %141 = tpu.matmul %140, %128, %cst_31 {dimension_numbers = #tpu.dot_dimension_numbers<[2], [1], [1], [2], [0, 0, 0, 1, 1, 2], [0], [0]>} : vector<2x8x8xbf16>, vector<2x8x4xbf16>, vector<2x8x4xf32> -> vector<2x8x4xf32>
    "tpu.trace_stop"() : () -> ()
    %142 = vector.extract_strided_slice %8 {offsets = [0, 28], sizes = [16, 4], strides = [1, 1]} : vector<16x96xbf16> to vector<16x4xbf16>
    %143 = vector.shape_cast %142 : vector<16x4xbf16> to vector<2x8x4xbf16>
    %144 = vector.extract_strided_slice %8 {offsets = [0, 60], sizes = [16, 4], strides = [1, 1]} : vector<16x96xbf16> to vector<16x4xbf16>
    %145 = vector.shape_cast %144 : vector<16x4xbf16> to vector<2x8x4xbf16>
    %146 = vector.extract_strided_slice %8 {offsets = [0, 92], sizes = [16, 4], strides = [1, 1]} : vector<16x96xbf16> to vector<16x4xbf16>
    %147 = vector.shape_cast %146 : vector<16x4xbf16> to vector<2x8x4xbf16>
    "tpu.trace_start"() <{level = 10 : i32, message = "bnd,bmd->bnm"}> : () -> ()
    %cst_32 = arith.constant dense<0.000000e+00> : vector<2x8x8xf32>
    %148 = tpu.matmul %143, %145, %cst_32 {dimension_numbers = #tpu.dot_dimension_numbers<[2], [2], [1], [1], [0, 0, 0, 1, 1, 1], [0], [0]>} : vector<2x8x4xbf16>, vector<2x8x4xbf16>, vector<2x8x8xf32> -> vector<2x8x8xf32>
    "tpu.trace_stop"() : () -> ()
    %cst_33 = arith.constant dense<0xFF800000> : vector<2x8xf32>
    %149 = vector.multi_reduction <maximumf>, %148, %cst_33 [2] : vector<2x8x8xf32> to vector<2x8xf32>
    %150 = vector.shape_cast %149 : vector<2x8xf32> to vector<2x8x1xf32>
    %151 = vector.broadcast %150 : vector<2x8x1xf32> to vector<2x8x8xf32>
    %152 = arith.subf %148, %151 : vector<2x8x8xf32>
    %153 = math.exp %152 : vector<2x8x8xf32>
    %cst_34 = arith.constant dense<0.000000e+00> : vector<2x8xf32>
    %154 = vector.multi_reduction <add>, %153, %cst_34 [2] : vector<2x8x8xf32> to vector<2x8xf32>
    %155 = vector.shape_cast %154 : vector<2x8xf32> to vector<2x8x1xf32>
    %156 = tpu.reciprocal %155 {approx = true} : vector<2x8x1xf32> -> vector<2x8x1xf32>
    %157 = vector.broadcast %156 : vector<2x8x1xf32> to vector<2x8x8xf32>
    %158 = arith.mulf %153, %157 : vector<2x8x8xf32>
    %159 = arith.truncf %158 : vector<2x8x8xf32> to vector<2x8x8xbf16>
    "tpu.trace_start"() <{level = 10 : i32, message = "bnm,bmd->bnd"}> : () -> ()
    %cst_35 = arith.constant dense<0.000000e+00> : vector<2x8x4xf32>
    %160 = tpu.matmul %159, %147, %cst_35 {dimension_numbers = #tpu.dot_dimension_numbers<[2], [1], [1], [2], [0, 0, 0, 1, 1, 2], [0], [0]>} : vector<2x8x8xbf16>, vector<2x8x4xbf16>, vector<2x8x4xf32> -> vector<2x8x4xf32>
    "tpu.trace_stop"() : () -> ()
    %161 = tpu.concatenate %27, %46, %65, %84, %103, %122, %141, %160 in 2 : vector<2x8x4xf32>, vector<2x8x4xf32>, vector<2x8x4xf32>, vector<2x8x4xf32>, vector<2x8x4xf32>, vector<2x8x4xf32>, vector<2x8x4xf32>, vector<2x8x4xf32> -> vector<2x8x32xf32>
    %162 = arith.truncf %161 : vector<2x8x32xf32> to vector<2x8x32xbf16>
    %163 = vector.shape_cast %162 : vector<2x8x32xbf16> to vector<16x32xbf16>
    %c0_36 = arith.constant 0 : index
    %c0_37 = arith.constant 0 : index
    %164 = vector.load %arg18[%c0_36, %c0_37] : memref<16x32xf32, #tpu.memory_space<vmem>>, vector<16x32xf32>
    %165 = arith.index_cast %arg1 : i32 to index
    %c0_38 = arith.constant 0 : index
    %c0_39 = arith.constant 0 : index
    %166 = vector.load %arg8[%165, %c0_38, %c0_39] : memref<1x32x32xbf16, #tpu.memory_space<vmem>>, vector<1x32x32xbf16>
    %167 = vector.shape_cast %166 : vector<1x32x32xbf16> to vector<32x32xbf16>
    %cst_40 = arith.constant dense<0.000000e+00> : vector<16x32xf32>
    %168 = tpu.matmul %163, %167, %cst_40 {dimension_numbers = #tpu.dot_dimension_numbers<[1], [0], [0], [1], [0, 0, 1, 1], [], []>} : vector<16x32xbf16>, vector<32x32xbf16>, vector<16x32xf32> -> vector<16x32xf32>
    %169 = arith.addf %164, %168 : vector<16x32xf32>
    %c0_41 = arith.constant 0 : index
    %c0_42 = arith.constant 0 : index
    %170 = vector.load %arg18[%c0_41, %c0_42] : memref<16x32xf32, #tpu.memory_space<vmem>>, vector<16x32xf32>
    tpu.vector_store %arg18[%c0_41, %c0_42], %169 {strides = array<i32>} : memref<16x32xf32, #tpu.memory_space<vmem>>, vector<16x32xf32>,
    %c0_i32_43 = arith.constant 0 : i32
    %171 = arith.cmpi eq, %arg1, %c0_i32_43 : i32
    %172 = arith.extui %171 : i1 to i32
    %c0_i32_44 = arith.constant 0 : i32
    %173 = arith.cmpi ne, %172, %c0_i32_44 : i32
    scf.if %173 {
      %c0_45 = arith.constant 0 : index
      %c0_46 = arith.constant 0 : index
      %c0_47 = arith.constant 0 : index
      %174 = vector.load %arg3[%c0_45, %c0_46, %c0_47] : memref<2x8x32xf32, #tpu.memory_space<vmem>>, vector<2x8x32xf32>
      %175 = vector.shape_cast %174 : vector<2x8x32xf32> to vector<16x32xf32>
      %c0_48 = arith.constant 0 : index
      %c0_49 = arith.constant 0 : index
      %176 = vector.load %arg18[%c0_48, %c0_49] : memref<16x32xf32, #tpu.memory_space<vmem>>, vector<16x32xf32>
      %177 = arith.addf %175, %176 : vector<16x32xf32>
      %c0_50 = arith.constant 0 : index
      %c0_51 = arith.constant 0 : index
      %178 = vector.load %arg10[%c0_50, %c0_51] : memref<1x32xf32, #tpu.memory_space<vmem>>, vector<1x32xf32>
      %c0_52 = arith.constant 0 : index
      %c0_53 = arith.constant 0 : index
      %179 = vector.load %arg11[%c0_52, %c0_53] : memref<1x32xf32, #tpu.memory_space<vmem>>, vector<1x32xf32>
      %cst_54 = arith.constant dense<0.000000e+00> : vector<16xf32>
      %180 = vector.multi_reduction <add>, %177, %cst_54 [1] : vector<16x32xf32> to vector<16xf32>
      %181 = vector.shape_cast %180 : vector<16xf32> to vector<16x1xf32>
      %cst_55 = arith.constant 3.200000e+01 : f32
      %182 = vector.broadcast %cst_55 : f32 to vector<16x1xf32>
      %183 = arith.divf %181, %182 : vector<16x1xf32>
      %184 = vector.broadcast %183 : vector<16x1xf32> to vector<16x32xf32>
      %185 = arith.subf %177, %184 : vector<16x32xf32>
      %186 = arith.mulf %185, %185 : vector<16x32xf32>
      %cst_56 = arith.constant dense<0.000000e+00> : vector<16xf32>
      %187 = vector.multi_reduction <add>, %186, %cst_56 [1] : vector<16x32xf32> to vector<16xf32>
      %188 = vector.shape_cast %187 : vector<16xf32> to vector<16x1xf32>
      %cst_57 = arith.constant 3.200000e+01 : f32
      %189 = vector.broadcast %cst_57 : f32 to vector<16x1xf32>
      %190 = arith.divf %188, %189 : vector<16x1xf32>
      %cst_58 = arith.constant 9.99999974E-6 : f32
      %191 = vector.broadcast %cst_58 : f32 to vector<16x1xf32>
      %192 = arith.addf %190, %191 : vector<16x1xf32>
      %193 = math.rsqrt %192 : vector<16x1xf32>
      %194 = vector.broadcast %193 : vector<16x1xf32> to vector<16x32xf32>
      %195 = arith.mulf %185, %194 : vector<16x32xf32>
      %196 = vector.broadcast %178 : vector<1x32xf32> to vector<16x32xf32>
      %197 = arith.mulf %195, %196 : vector<16x32xf32>
      %198 = vector.broadcast %179 : vector<1x32xf32> to vector<16x32xf32>
      %199 = arith.addf %197, %198 : vector<16x32xf32>
      %200 = arith.truncf %199 : vector<16x32xf32> to vector<16x32xbf16>
      %cst_59 = arith.constant 0.000000e+00 : f32
      %201 = vector.broadcast %cst_59 : f32 to vector<16x32xf32>
      %c0_60 = arith.constant 0 : index
      %c0_61 = arith.constant 0 : index
      %202 = vector.load %arg12[%c0_60, %c0_61] : memref<32x128xbf16, #tpu.memory_space<vmem>>, vector<32x128xbf16>
      %cst_62 = arith.constant dense<0.000000e+00> : vector<16x128xf32>
      %203 = tpu.matmul %200, %202, %cst_62 {dimension_numbers = #tpu.dot_dimension_numbers<[1], [0], [0], [1], [0, 0, 1, 1], [], []>} : vector<16x32xbf16>, vector<32x128xbf16>, vector<16x128xf32> -> vector<16x128xf32>
      %c0_63 = arith.constant 0 : index
      %c0_64 = arith.constant 0 : index
      %204 = vector.load %arg13[%c0_63, %c0_64] : memref<1x128xf32, #tpu.memory_space<vmem>>, vector<1x128xf32>
      %205 = vector.broadcast %204 : vector<1x128xf32> to vector<16x128xf32>
      %206 = arith.addf %203, %205 : vector<16x128xf32>
      %cst_65 = arith.constant 0.000000e+00 : f32
      %207 = vector.broadcast %cst_65 : f32 to vector<16x128xf32>
      %208 = arith.cmpf ogt, %206, %207 : vector<16x128xf32>
      %cst_66 = arith.constant 0.00999999977 : f32
      %209 = vector.broadcast %cst_66 : f32 to vector<16x128xf32>
      %210 = arith.mulf %209, %206 : vector<16x128xf32>
      %211 = arith.select %208, %206, %210 : vector<16x128xi1>, vector<16x128xf32>
      %212 = arith.truncf %211 : vector<16x128xf32> to vector<16x128xbf16>
      %c0_67 = arith.constant 0 : index
      %c0_68 = arith.constant 0 : index
      %213 = vector.load %arg14[%c0_67, %c0_68] : memref<128x32xbf16, #tpu.memory_space<vmem>>, vector<128x32xbf16>
      %cst_69 = arith.constant dense<0.000000e+00> : vector<16x32xf32>
      %214 = tpu.matmul %212, %213, %cst_69 {dimension_numbers = #tpu.dot_dimension_numbers<[1], [0], [0], [1], [0, 0, 1, 1], [], []>} : vector<16x128xbf16>, vector<128x32xbf16>, vector<16x32xf32> -> vector<16x32xf32>
      %215 = arith.addf %201, %214 : vector<16x32xf32>
      %216 = arith.addf %177, %215 : vector<16x32xf32>
      %c0_70 = arith.constant 0 : index
      %c0_71 = arith.constant 0 : index
      %217 = vector.load %arg15[%c0_70, %c0_71] : memref<1x32xf32, #tpu.memory_space<vmem>>, vector<1x32xf32>
      %218 = vector.broadcast %217 : vector<1x32xf32> to vector<16x32xf32>
      %219 = arith.addf %216, %218 : vector<16x32xf32>
      %220 = vector.shape_cast %219 : vector<16x32xf32> to vector<2x8x32xf32>
      %c0_72 = arith.constant 0 : index
      %c0_73 = arith.constant 0 : index
      %c0_74 = arith.constant 0 : index
      %221 = vector.load %arg16[%c0_72, %c0_73, %c0_74] : memref<2x8x32xf32, #tpu.memory_space<vmem>>, vector<2x8x32xf32>
      tpu.vector_store %arg16[%c0_72, %c0_73, %c0_74], %220 {strides = array<i32>} : memref<2x8x32xf32, #tpu.memory_space<vmem>>, vector<2x8x32xf32>,
    } else {
    }
    return
  }
  func.func @transform_0(%arg0: i32, %arg1: i32, %arg2: memref<1xf32, #tpu.memory_space<smem>>) -> (i32, i32, i32) {
    %c0_i32 = arith.constant 0 : i32
    %c0_i32_0 = arith.constant 0 : i32
    %c0_i32_1 = arith.constant 0 : i32
    return %arg0, %c0_i32, %c0_i32_0 : i32, i32, i32
  }
  func.func @transform_1(%arg0: i32, %arg1: i32, %arg2: memref<1xf32, #tpu.memory_space<smem>>) -> (i32, i32, i32) {
    %c0_i32 = arith.constant 0 : i32
    %c0_i32_0 = arith.constant 0 : i32
    %c0_i32_1 = arith.constant 0 : i32
    return %arg0, %c0_i32, %c0_i32_0 : i32, i32, i32
  }
  func.func @transform_2(%arg0: i32, %arg1: i32, %arg2: memref<1xf32, #tpu.memory_space<smem>>) -> (i32, i32) {
    %c0_i32 = arith.constant 0 : i32
    %c0_i32_0 = arith.constant 0 : i32
    %c0_i32_1 = arith.constant 0 : i32
    return %c0_i32, %c0_i32_0 : i32, i32
  }
  func.func @transform_3(%arg0: i32, %arg1: i32, %arg2: memref<1xf32, #tpu.memory_space<smem>>) -> (i32, i32) {
    %c0_i32 = arith.constant 0 : i32
    %c0_i32_0 = arith.constant 0 : i32
    %c0_i32_1 = arith.constant 0 : i32
    return %c0_i32, %c0_i32_0 : i32, i32
  }
  func.func @transform_4(%arg0: i32, %arg1: i32, %arg2: memref<1xf32, #tpu.memory_space<smem>>) -> (i32, i32, i32) {
    %c0_i32 = arith.constant 0 : i32
    %c0_i32_0 = arith.constant 0 : i32
    %c0_i32_1 = arith.constant 0 : i32
    %c0_i32_2 = arith.constant 0 : i32
    return %c0_i32, %c0_i32_0, %c0_i32_1 : i32, i32, i32
  }
  func.func @transform_5(%arg0: i32, %arg1: i32, %arg2: memref<1xf32, #tpu.memory_space<smem>>) -> (i32, i32, i32) {
    %c0_i32 = arith.constant 0 : i32
    %c0_i32_0 = arith.constant 0 : i32
    %c0_i32_1 = arith.constant 0 : i32
    %c0_i32_2 = arith.constant 0 : i32
    return %c0_i32, %c0_i32_0, %c0_i32_1 : i32, i32, i32
  }
  func.func @transform_6(%arg0: i32, %arg1: i32, %arg2: memref<1xf32, #tpu.memory_space<smem>>) -> (i32, i32) {
    %c0_i32 = arith.constant 0 : i32
    %c0_i32_0 = arith.constant 0 : i32
    %c0_i32_1 = arith.constant 0 : i32
    return %c0_i32, %c0_i32_0 : i32, i32
  }
  func.func @transform_7(%arg0: i32, %arg1: i32, %arg2: memref<1xf32, #tpu.memory_space<smem>>) -> (i32, i32) {
    %c0_i32 = arith.constant 0 : i32
    %c0_i32_0 = arith.constant 0 : i32
    %c0_i32_1 = arith.constant 0 : i32
    return %c0_i32, %c0_i32_0 : i32, i32
  }
  func.func @transform_8(%arg0: i32, %arg1: i32, %arg2: memref<1xf32, #tpu.memory_space<smem>>) -> (i32, i32) {
    %c0_i32 = arith.constant 0 : i32
    %c0_i32_0 = arith.constant 0 : i32
    %c0_i32_1 = arith.constant 0 : i32
    return %c0_i32, %c0_i32_0 : i32, i32
  }
  func.func @transform_9(%arg0: i32, %arg1: i32, %arg2: memref<1xf32, #tpu.memory_space<smem>>) -> (i32, i32) {
    %c0_i32 = arith.constant 0 : i32
    %c0_i32_0 = arith.constant 0 : i32
    %c0_i32_1 = arith.constant 0 : i32
    return %c0_i32, %c0_i32_0 : i32, i32
  }
  func.func @transform_10(%arg0: i32, %arg1: i32, %arg2: memref<1xf32, #tpu.memory_space<smem>>) -> (i32, i32) {
    %c0_i32 = arith.constant 0 : i32
    %c0_i32_0 = arith.constant 0 : i32
    %c0_i32_1 = arith.constant 0 : i32
    return %c0_i32, %c0_i32_0 : i32, i32
  }
  func.func @transform_11(%arg0: i32, %arg1: i32, %arg2: memref<1xf32, #tpu.memory_space<smem>>) -> (i32, i32) {
    %c0_i32 = arith.constant 0 : i32
    %c0_i32_0 = arith.constant 0 : i32
    %c0_i32_1 = arith.constant 0 : i32
    return %c0_i32, %c0_i32_0 : i32, i32
  }
  func.func @transform_12(%arg0: i32, %arg1: i32, %arg2: memref<1xf32, #tpu.memory_space<smem>>) -> (i32, i32) {
    %c0_i32 = arith.constant 0 : i32
    %c0_i32_0 = arith.constant 0 : i32
    %c0_i32_1 = arith.constant 0 : i32
    return %c0_i32, %c0_i32_0 : i32, i32
  }
  func.func @transform_13(%arg0: i32, %arg1: i32, %arg2: memref<1xf32, #tpu.memory_space<smem>>) -> (i32, i32, i32) {
    %c0_i32 = arith.constant 0 : i32
    %c0_i32_0 = arith.constant 0 : i32
    %c0_i32_1 = arith.constant 0 : i32
    return %arg0, %c0_i32, %c0_i32_0 : i32, i32, i32
  }
}

</mosaic_0001>

<bundles_post_ra>
// kernel: tpu_custom_call.1
= control target key start
LH: loop header
LB: loop body
LE: loop exit
PB: predicated region body
PF: predicated region fallthrough
CT: control target
= control target key end

     0   :  { %vm56_vm0 = vcmask 261120   ;;  %s2274_s0 = inlined_call_operand.<no memory space> [shape: f32[1], index: 0, kind: input, shape index: {}]   ;;  %s2275_s1 = inlined_call_operand.vmem [shape: f32[2,8,32], index: 1, kind: input, shape index: {}]   ;;  %s2276_s2 = inlined_call_operand.vmem [shape: f32[2,8,1], index: 2, kind: input, shape index: {}]   ;;  %s2277_s3 = inlined_call_operand.vmem [shape: f32[1,32], index: 3, kind: input, shape index: {}]   ;;  %s2278_s4 = inlined_call_operand.vmem [shape: f32[1,32], index: 4, kind: input, shape index: {}]   ;;  %s2279_s5 = inlined_call_operand.vmem [shape: bf16[1,32,96], index: 5, kind: input, shape index: {}]   ;;  %s2280_s6 = inlined_call_operand.vmem [shape: bf16[1,32,32], index: 6, kind: input, shape index: {}]   ;;  %s2281_s7 = inlined_call_operand.vmem [shape: f32[1,32], index: 7, kind: input, shape index: {}]   ;;  %s2282_s8 = inlined_call_operand.vmem [shape: f32[1,32], index: 8, kind: input, shape index: {}]   ;;  %s2283_s9 = inlined_call_operand.vmem [shape: f32[1,32], index: 9, kind: input, shape index: {}]   ;;  %s2284_s10 = inlined_call_operand.vmem [shape: bf16[32,128], index: 10, kind: input, shape index: {}]   ;;  %s2285_s11 = inlined_call_operand.vmem [shape: f32[1,128], index: 11, kind: input, shape index: {}]   ;;  %s2286_s12 = inlined_call_operand.vmem [shape: bf16[128,32], index: 12, kind: input, shape index: {}]   ;;  %s2287_s13 = inlined_call_operand.vmem [shape: f32[1,32], index: 13, kind: input, shape index: {}]   ;;  %s2288_s14 = inlined_call_operand.hbm [shape: f32[2,8,32], index: 14, kind: output, shape index: {}]  }
   0x1   :  { %v52_v0 = vld [vmem:[%s2275_s1] sm:$0xff] }
   0x2   :  { %v57_v1 = vsel %vm56_vm0, %v52_v0, 0.0 }
   0x3   :  { %58 = vadd.xlane.f32.xlu0 %v57_v1 }
   0x4   :  { %20 = vsyncpa [#allocation7], 0  ;;  %v53_v2 = vld [vmem:[%s2275_s1 + $0x8] sm:$0xff]  ;;  %v1728_v4 = vmov 32.0   ;;  %v118_v7 = vld [vmem:[%s2276_s2] sm:$0xff]  ;;  %v121_v8 = vstv %s2274_s0  ;;  %v1729_v9 = vmov 0  }
   0x5   :  { %v60_v3 = vsel %vm56_vm0, %v53_v2, 0.0  ;;  %1628 = vrcp.f32 %v1728_v4  ;;  %1584 = vset.pattern.permute.xlu2 %v1729_v9  ;;  %v122_v10 = vmul.f32 %v121_v8, %v118_v7  ;;  %1620 = vset.pattern.permute.xlu0 %v1729_v9  ;;  %v119_v12 = vld [vmem:[%s2276_s2 + $0x8] sm:$0xff]  ;;  %v1536_v35 = vld [vmem:[%s2279_s5] sm:$0xff]  ;;  %vm138_vm8 = vcmask 257024   ;;  %s1732_s28 = smov 124   ;;  %s1733_s29 = smov 120  }
   0x6   :  { %v123_v14 = vmul.f32 %v121_v8, %v119_v12  ;;  %v1537_v32 = vld [vmem:[%s2279_s5 + $0x8] sm:$0xff]  ;;  %v1621_v43 = vld [vmem:[%s2277_s3] ss:$0 sm:$0xff]  ;;  %s1730_s3 = smov 92   ;;  %s1734_s30 = smov 84   ;;  %vm198_vm9 = vcmask 31744  }
   0x7   :  { %126 = vperm.xlu2 %1584, %v122_v10   ;;  %183 = vmatpush.bf16.msra.mxu0 %v1537_v32  ;;  %v1622_v47 = vld [vmem:[%s2278_s4] ss:$0 sm:$0xff]  ;;  %s1731_s4 = smov 96   ;;  %s1735_s15 = smov 88   ;;  %vm272_vm10 = vcmask 1043456   ;;  %vm242_vm11 = vcmask 64512  }
   0x8   :  { %s1736_s16 = smov 80   ;;  %s1737_s17 = smov 116   ;;  %vm1154_vm12 = vcmask 97280   ;;  %vm1157_vm13 = vcmask 130048   ;;  %vm1160_vm14 = vcmask 162816   ;;  %vm1163_vm15 = vcmask 195584  }
   0x9   :  { %s1738_s18 = smov 112   ;;  %s1739_s19 = smov 108  }
   0xa   :  { %s1740_s20 = smov 72   ;;  %s1741_s21 = smov 76  }
   0xb   :  { %61 = vadd.xlane.f32.xlu0 %v60_v3  ;;  %v1629_v5 = vpop.eup %1628  ;;  %184 = vmatpush.bf16.msra.mxu0 %v1536_v35  ;;  %s1742_s22 = smov 68   ;;  %s1743_s0 = smov 104  }
   0xc   :  { %v64_v6 = vmul.f32 32.0, %v1629_v5  ;;  %vm68_vm1 = vweird.f32 %v1629_v5  ;;  %s1744_s2 = smov 100   ;;  %s1745_s23 = smov 64  }
   0xd   :  { %s1746_s24 = smov 60   ;;  %s1747_s25 = smov 56  }
   0xe   :  { %v65_v11 = vsub.f32 1.0, %v64_v6  ;;  %s1748_s26 = smov 52   ;;  %s1749_s5 = smov 48  }
   0xf   :  { %131 = vperm.xlu2 %1584, %v123_v14   ;;  %s1750_s27 = smov 40  }
  0x10   :  { %v66_v13 = vmul.f32 %v1629_v5, %v65_v11 }
  0x12   :  { %v67_v15 = vadd.f32 %v1629_v5, %v66_v13 }
  0x14   :  { %v1854_v16 = vsel %vm68_vm1, %v1629_v5, %v67_v15  ;;  %vm1166_vm1 = vcmask 228352  }
  0x61   :  { %v127_v51 = vpop.permute.xlu2 %126 }
  0x69   :  { %v132_v60 = vpop.permute.xlu2 %131 }
  0x76   :  { %v59_v17 = vpop.xlane.xlu0 %58 }
  0x77   :  { %v70_v18 = vmul.f32 %v1854_v16, %v59_v17 }
  0x79   :  { %v72_v19 = vsub.f32 %v52_v0, %v70_v18 }
  0x7b   :  { %v74_v20 = vmul.f32 %v72_v19, %v72_v19 }
  0x7d   :  { %v76_v21 = vsel %vm56_vm0, %v74_v20, 0.0 }
  0x7e   :  { %77 = vadd.xlane.f32.xlu1 %v76_v21  ;;  %v62_v22 = vpop.xlane.xlu0 %61 }
  0x7f   :  { %v71_v23 = vmul.f32 %v1854_v16, %v62_v22 }
  0x81   :  { %v73_v24 = vsub.f32 %v53_v2, %v71_v23 }
  0x83   :  { %v75_v25 = vmul.f32 %v73_v24, %v73_v24 }
  0x85   :  { %v79_v26 = vsel %vm56_vm0, %v75_v25, 0.0 }
  0x86   :  { %80 = vadd.xlane.f32.xlu1 %v79_v26 }
  0xf1   :  { %v78_v27 = vpop.xlane.xlu1 %77 }
  0xf2   :  { %v82_v28 = vmul.f32 %v78_v27, %v1854_v16 }
  0xf4   :  { %v84_v29 = vadd.f32 1e-05, %v82_v28 }
  0xf6   :  { %1630 = vrsqrt.f32 %v84_v29  ;;  %vm92_vm3 = vweird.f32 %v84_v29 }
  0xf9   :  { %v81_v30 = vpop.xlane.xlu1 %80 }
  0xfa   :  { %v83_v31 = vmul.f32 %v81_v30, %v1854_v16 }
  0xfc   :  { %v1631_v33 = vpop.eup %1630  ;;  %v85_v34 = vadd.f32 1e-05, %v83_v31 }
  0xfd   :  { %v87_v36 = vmul.f32 %v1631_v33, %v84_v29  ;;  %vm93_vm2 = vweird.f32 %v1631_v33 }
  0xfe   :  { %1632 = vrsqrt.f32 %v85_v34  ;;  %vm94_vm4 = vmor %vm92_vm3, %vm93_vm2  ;;  %vm102_vm6 = vweird.f32 %v85_v34 }
  0xff   :  { %v88_v37 = vmul.f32 %v1631_v33, %v87_v36 }
 0x101   :  { %v89_v38 = vmul.f32 0.5, %v88_v37 }
 0x103   :  { %v90_v39 = vsub.f32 1.5, %v89_v38 }
 0x104   :  { %v1633_v40 = vpop.eup %1632 }
 0x105   :  { %v91_v41 = vmul.f32 %v1631_v33, %v90_v39  ;;  %v97_v42 = vmul.f32 %v1633_v40, %v85_v34  ;;  %vm103_vm5 = vweird.f32 %v1633_v40 }
 0x106   :  { %vm104_vm7 = vmor %vm102_vm6, %vm103_vm5 }
 0x107   :  { %v98_v44 = vmul.f32 %v1633_v40, %v97_v42  ;;  %v95_v45 = vsel %vm94_vm4, %v1631_v33, %v91_v41 }
 0x108   :  { %v106_v46 = vmul.f32 %v95_v45, %v72_v19 }
 0x109   :  { %v99_v48 = vmul.f32 0.5, %v98_v44 }
 0x10a   :  { %v111_v49 = vmul.f32 %v1621_v43, %v106_v46 }
 0x10b   :  { %v100_v50 = vsub.f32 1.5, %v99_v48 }
 0x10c   :  { %v116_v52 = vadd.f32 %v1622_v47, %v111_v49 }
 0x10d   :  { %v101_v53 = vmul.f32 %v1633_v40, %v100_v50 }
 0x10e   :  { %v134_v54 = vadd.f32 %v127_v51, %v116_v52 }
 0x10f   :  { %v105_v55 = vsel %vm104_vm7, %v1633_v40, %v101_v53 }
 0x110   :  { %v136_v56 = vpack.c.bf16 %v134_v54, %v134_v54  ;;  %v107_v57 = vmul.f32 %v105_v55, %v73_v24 }
 0x112   :  { %139 = vst.msk [vmem:[#allocation2] sm:$0xf] %vm138_vm8, %v136_v56  ;;  %v112_v58 = vmul.f32 %v1621_v43, %v107_v57 }
 0x114   :  { %v117_v59 = vadd.f32 %v1622_v47, %v112_v58 }
 0x116   :  { %v135_v61 = vadd.f32 %v132_v60, %v117_v59 }
 0x118   :  { %v137_v62 = vpack.c.bf16 %v135_v61, %v135_v61 }
 0x11a   :  { %140 = vst.msk [vmem:[#allocation2 + $0x4] sm:$0xf] %vm138_vm8, %v137_v62 }
 0x121   :  { %v1535_v63 = vld [vmem:[#allocation2] sm:$0xff] }
 0x122   :  { %1452 = vmatmul.msk.bf16.vlgmr.msra.gmra.mxu0 %vm56_vm0, %v1535_v63 }
 0x19f   :  { %v186_v0 = vpop.f32.mrf.mxu0 }
 0x1a0   :  { %v1875_v1 = vpack.c.bf16 %v186_v0, %v186_v0 }
 0x1a2   :  { %v194_v2 = vunpack.c.l.b16 %v1875_v1 }
 0x1a4   :  { %v1878_v3 = vpack.c.b16 %v194_v2, %v194_v2 }
 0x1a6   :  { %312 = vrot.lane.b32.xlu2 %v1878_v3, %s1730_s3  ;;  %196 = vrot.lane.b32.xlu0 %v1878_v3, %s1731_s4 }
 0x1a7   :  { %v188_v4 = vpop.f32.mrf.mxu0 }
 0x1a8   :  { %v1882_v5 = vpack.c.bf16 %v188_v4, %v188_v4 }
 0x1aa   :  { %v219_v6 = vunpack.c.l.b16 %v1882_v5 }
 0x1ac   :  { %v1885_v7 = vpack.c.b16 %v219_v6, %v219_v6 }
 0x1ae   :  { %310 = vrot.lane.b32.xlu2 %v1878_v3, %s1732_s28  ;;  %333 = vrot.lane.b32.xlu0 %v1885_v7, %s1732_s28  ;;  %s1753_s28 = smov 4  }
 0x1af   :  { %221 = vrot.lane.b32.xlu1 %v1885_v7, %s1731_s4  ;;  %s1752_s4 = smov 36  }
 0x1b6   :  { %422 = vrot.lane.b32.xlu0 %v1878_v3, %s1733_s29  ;;  %335 = vrot.lane.b32.xlu2 %v1885_v7, %s1730_s3  ;;  %s1751_s3 = smov 44  }
 0x1b7   :  { %536 = vrot.lane.b32.xlu1 %v1878_v3, %s1734_s30 }
 0x1be   :  { %559 = vrot.lane.b32.xlu0 %v1885_v7, %s1734_s30  ;;  %424 = vrot.lane.b32.xlu2 %v1878_v3, %s1735_s15  ;;  %s1755_s30 = smov 12  }
 0x1bf   :  { %447 = vrot.lane.b32.xlu1 %v1885_v7, %s1735_s15  ;;  %s1756_s15 = smov 16  }
 0x1c6   :  { %648 = vrot.lane.b32.xlu0 %v1878_v3, %s1736_s16  ;;  %534 = vrot.lane.b32.xlu2 %v1878_v3, %s1737_s17 }
 0x1c7   :  { %646 = vrot.lane.b32.xlu1 %v1878_v3, %s1738_s18 }
 0x1ce   :  { %758 = vrot.lane.b32.xlu0 %v1878_v3, %s1739_s19  ;;  %445 = vrot.lane.b32.xlu2 %v1885_v7, %s1733_s29  ;;  %s1754_s29 = smov 8  }
 0x1cf   :  { %872 = vrot.lane.b32.xlu1 %v1878_v3, %s1740_s20 }
 0x1d6   :  { %669 = vrot.lane.b32.xlu0 %v1885_v7, %s1738_s18  ;;  %760 = vrot.lane.b32.xlu2 %v1878_v3, %s1741_s21  ;;  %s1759_s18 = smov 28  }
 0x1d7   :  { %557 = vrot.lane.b32.xlu1 %v1885_v7, %s1737_s17  ;;  %s1758_s17 = smov 24  }
 0x1de   :  { %984 = vrot.lane.b32.xlu0 %v1878_v3, %s1742_s22  ;;  %870 = vrot.lane.b32.xlu2 %v1878_v3, %s1743_s0 }
 0x1df   :  { %982 = vrot.lane.b32.xlu1 %v1878_v3, %s1744_s2 }
 0x1e6   :  { %267 = vrot.lane.b32.xlu0 %v1878_v3, %s1745_s23  ;;  %671 = vrot.lane.b32.xlu2 %v1885_v7, %s1736_s16  ;;  %s1757_s16 = smov 20  }
 0x1e7   :  { %783 = vrot.lane.b32.xlu1 %v1885_v7, %s1741_s21 }
 0x1ee   :  { %895 = vrot.lane.b32.xlu0 %v1885_v7, %s1740_s20  ;;  %380 = vrot.lane.b32.xlu2 %v1878_v3, %s1746_s24 }
 0x1ef   :  { %893 = vrot.lane.b32.xlu1 %v1885_v7, %s1743_s0 }
 0x1f6   :  { %1005 = vrot.lane.b32.xlu0 %v1885_v7, %s1744_s2  ;;  %492 = vrot.lane.b32.xlu2 %v1878_v3, %s1747_s25 }
 0x1f7   :  { %289 = vrot.lane.b32.xlu1 %v1885_v7, %s1745_s23 }
 0x1fe   :  { %401 = vrot.lane.b32.xlu0 %v1885_v7, %s1746_s24  ;;  %781 = vrot.lane.b32.xlu2 %v1885_v7, %s1739_s19 }
 0x1ff   :  { %513 = vrot.lane.b32.xlu1 %v1885_v7, %s1747_s25 }
 0x200   :  { %v313_v8 = vpop.permute.xlu2 %312 }
 0x201   :  { %v318_v9 = vsel %vm198_vm9, %v313_v8, 0 }
 0x202   :  { %327 = vmatpush.bf16.xpose.msrb.mxu0 %v318_v9 }
 0x206   :  { %1007 = vrot.lane.b32.xlu2 %v1885_v7, %s1742_s22 }
 0x208   :  { %v311_v10 = vpop.permute.xlu2 %310 }
 0x209   :  { %1457 = vmatmul.msk.bf16.vlgmr.msrb.gmra.mxu0 %vm198_vm9, %v311_v10 }
 0x210   :  { %v336_v11 = vpop.permute.xlu2 %335 }
 0x211   :  { %v341_v17 = vsel %vm198_vm9, %v336_v11, 0 }
 0x218   :  { %v197_v12 = vpop.permute.xlu0 %196  ;;  %v425_v13 = vpop.permute.xlu2 %424 }
 0x219   :  { %v430_v14 = vsel %vm198_vm9, %v425_v13, 0  ;;  %v203_v15 = vsel %vm198_vm9, %v197_v12, 0 }
 0x21a   :  { %212 = vmatpush.bf16.xpose.msra.mxu1 %v203_v15  ;;  %439 = vmatpush.bf16.xpose.msra.mxu0 %v430_v14 }
 0x220   :  { %v334_v18 = vpop.permute.xlu0 %333  ;;  %v535_v19 = vpop.permute.xlu2 %534 }
 0x221   :  { %v222_v20 = vpop.permute.xlu1 %221  ;;  %1453 = vmatmul.msk.bf16.vlgmr.msra.gmra.mxu1 %vm198_vm9, %v1875_v1 }
 0x222   :  { %350 = vmatpush.bf16.xpose.msrb.mxu1 %v341_v17  ;;  %v227_v21 = vsel %vm198_vm9, %v222_v20, 0 }
 0x223   :  { %236 = vmatpush.bf16.xpose.msra.mxu2 %v227_v21 }
 0x228   :  { %v423_v22 = vpop.permute.xlu0 %422  ;;  %v446_v23 = vpop.permute.xlu2 %445 }
 0x229   :  { %v537_v24 = vpop.permute.xlu1 %536  ;;  %1461 = vmatmul.msk.bf16.vlgmr.msra.gmra.mxu0 %vm198_vm9, %v423_v22 }
 0x22a   :  { %v542_v25 = vsel %vm198_vm9, %v537_v24, 0  ;;  %1454 = vmatmul.msk.bf16.vlgmr.msra.gmra.mxu2 %vm198_vm9, %v1882_v5 }
 0x22b   :  { %551 = vmatpush.bf16.xpose.msrb.mxu0 %v542_v25 }
 0x230   :  { %v560_v26 = vpop.permute.xlu0 %559  ;;  %v761_v27 = vpop.permute.xlu2 %760 }
 0x231   :  { %v565_v28 = vsel %vm198_vm9, %v560_v26, 0  ;;  %v448_v29 = vpop.permute.xlu1 %447  ;;  %1458 = vmatmul.msk.bf16.vlgmr.msrb.gmra.mxu1 %vm198_vm9, %v334_v18  ;;  %v766_v35 = vsel %vm198_vm9, %v761_v27, 0 }
 0x232   :  { %v453_v30 = vsel %vm198_vm9, %v448_v29, 0 }
 0x233   :  { %462 = vmatpush.bf16.xpose.msra.mxu1 %v453_v30 }
 0x238   :  { %v649_v31 = vpop.permute.xlu0 %648  ;;  %v871_v32 = vpop.permute.xlu2 %870 }
 0x239   :  { %v654_v33 = vsel %vm198_vm9, %v649_v31, 0  ;;  %v647_v34 = vpop.permute.xlu1 %646  ;;  %1465 = vmatmul.msk.bf16.vlgmr.msrb.gmra.mxu0 %vm198_vm9, %v535_v19 }
 0x23a   :  { %663 = vmatpush.bf16.xpose.msra.mxu0 %v654_v33 }
 0x23b   :  { %574 = vmatpush.bf16.xpose.msrb.mxu1 %v565_v28 }
 0x240   :  { %v759_v36 = vpop.permute.xlu0 %758  ;;  %v672_v37 = vpop.permute.xlu2 %671 }
 0x241   :  { %v677_v38 = vsel %vm198_vm9, %v672_v37, 0  ;;  %v873_v39 = vpop.permute.xlu1 %872  ;;  %1462 = vmatmul.msk.bf16.vlgmr.msra.gmra.mxu1 %vm198_vm9, %v446_v23 }
 0x242   :  { %775 = vmatpush.bf16.xpose.msrb.mxu0 %v766_v35  ;;  %v878_v42 = vsel %vm198_vm9, %v873_v39, 0 }
 0x243   :  { %686 = vmatpush.bf16.xpose.msra.mxu1 %v677_v38 }
 0x248   :  { %v670_v40 = vpop.permute.xlu0 %669  ;;  %v1941_v41 = vpop.permute.xlu2 %380 }
 0x249   :  { %v558_v43 = vpop.permute.xlu1 %557  ;;  %1469 = vmatmul.msk.bf16.vlgmr.msra.gmra.mxu0 %vm198_vm9, %v647_v34 }
 0x24a   :  { %887 = vmatpush.bf16.xpose.msra.mxu0 %v878_v42 }
 0x250   :  { %v985_v44 = vpop.permute.xlu0 %984  ;;  %v493_v45 = vpop.permute.xlu2 %492 }
 0x251   :  { %v983_v46 = vpop.permute.xlu1 %982  ;;  %1466 = vmatmul.msk.bf16.vlgmr.msrb.gmra.mxu1 %vm198_vm9, %v558_v43  ;;  %v498_v47 = vsel %vm272_vm10, %v493_v45, 0  ;;  %v990_v49 = vsel %vm198_vm9, %v985_v44, 0 }
 0x252   :  { %507 = vmatpush.bf16.msrb.mxu2 %v498_v47 }
 0x258   :  { %v268_v48 = vpop.permute.xlu0 %267  ;;  %v782_v56 = vpop.permute.xlu2 %781 }
 0x259   :  { %v784_v50 = vpop.permute.xlu1 %783  ;;  %1473 = vmatmul.msk.bf16.vlgmr.msrb.gmra.mxu0 %vm198_vm9, %v759_v36  ;;  %v274_v51 = vsel %vm272_vm10, %v268_v48, 0 }
 0x25a   :  { %v789_v52 = vsel %vm198_vm9, %v784_v50, 0  ;;  %999 = vmatpush.bf16.xpose.msrb.mxu0 %v990_v49  ;;  %283 = vmatpush.bf16.msra.mxu3 %v274_v51 }
 0x25b   :  { %798 = vmatpush.bf16.xpose.msrb.mxu1 %v789_v52 }
 0x260   :  { %v896_v53 = vpop.permute.xlu0 %895  ;;  %v1008_v59 = vpop.permute.xlu2 %1007 }
 0x261   :  { %v901_v54 = vsel %vm198_vm9, %v896_v53, 0  ;;  %v894_v55 = vpop.permute.xlu1 %893  ;;  %1470 = vmatmul.msk.bf16.vlgmr.msra.gmra.mxu1 %vm198_vm9, %v670_v40  ;;  %v1013_v60 = vsel %vm198_vm9, %v1008_v59, 0 }
 0x263   :  { %910 = vmatpush.bf16.xpose.msra.mxu1 %v901_v54 }
 0x268   :  { %v1006_v0 = vpop.permute.xlu0 %1005 }
 0x269   :  { %v290_v57 = vpop.permute.xlu1 %289  ;;  %1477 = vmatmul.msk.bf16.vlgmr.msra.gmra.mxu0 %vm198_vm9, %v871_v32 }
 0x26a   :  { %v295_v58 = vsel %vm272_vm10, %v290_v57, 0 }
 0x26b   :  { %304 = vmatpush.bf16.msrb.mxu3 %v295_v58 }
 0x270   :  { %v2010_v36 = vpop.permute.xlu0 %401 }
 0x271   :  { %1474 = vmatmul.msk.bf16.vlgmr.msrb.gmra.mxu1 %vm198_vm9, %v782_v56 }
 0x272   :  { %1022 = vmatpush.bf16.xpose.msrb.mxu1 %v1013_v60 }
 0x279   :  { %1481 = vmatmul.msk.bf16.vlgmr.msrb.gmra.mxu0 %vm198_vm9, %v983_v46 }
 0x281   :  { %1478 = vmatmul.msk.bf16.vlgmr.msra.gmra.mxu1 %vm198_vm9, %v894_v55 }
 0x286   :  { %v1959_v61 = vpop.f32.mrf.mxu0 }
 0x287   :  { %v356_v62 = vsel %vm242_vm11, %v1959_v61, -inf }
 0x288   :  { %357 = vmax.xlane.f32.xlu0 %v356_v62 }
 0x28e   :  { %v331_v63 = vpop.f32.mrf.mxu0 }
 0x291   :  { %1482 = vmatmul.msk.bf16.vlgmr.msrb.gmra.mxu1 %vm198_vm9, %v1006_v0 }
 0x29c   :  { %604 = vrot.lane.b32.xlu0 %v1878_v3, %s1748_s26 }
 0x29e   :  { %v1965_v1 = vpop.f32.mrf.mxu1 }
 0x29f   :  { %v243_v2 = vsel %vm242_vm11, %v1965_v1, -inf }
 0x2a0   :  { %244 = vmax.xlane.f32.xlu2 %v243_v2 }
 0x2a6   :  { %v216_v4 = vpop.f32.mrf.mxu1  ;;  %v1969_v5 = vpop.f32.mrf.mxu0 }
 0x2a7   :  { %v468_v35 = vsel %vm242_vm11, %v1969_v5, -inf }
 0x2ad   :  { %v1971_v6 = vpop.f32.mrf.mxu2 }
 0x2ae   :  { %v1973_v8 = vpop.f32.mrf.mxu1  ;;  %v443_v9 = vpop.f32.mrf.mxu0  ;;  %v246_v10 = vsel %vm242_vm11, %v1971_v6, -inf }
 0x2af   :  { %247 = vmax.xlane.f32.xlu1 %v246_v10  ;;  %v359_v31 = vsel %vm242_vm11, %v1973_v8, -inf }
 0x2b5   :  { %v240_v11 = vpop.f32.mrf.mxu2 }
 0x2b6   :  { %v354_v12 = vpop.f32.mrf.mxu1  ;;  %v1977_v13 = vpop.f32.mrf.mxu0 }
 0x2b7   :  { %v580_v40 = vsel %vm242_vm11, %v1977_v13, -inf }
 0x2b8   :  { %625 = vrot.lane.b32.xlu2 %v1885_v7, %s1748_s26 }
 0x2be   :  { %v1980_v14 = vpop.f32.mrf.mxu1  ;;  %v555_v15 = vpop.f32.mrf.mxu0 }
 0x2bf   :  { %v471_v17 = vsel %vm242_vm11, %v1980_v14, -inf }
 0x2c0   :  { %716 = vrot.lane.b32.xlu2 %v1878_v3, %s1749_s5  ;;  %472 = vmax.xlane.f32.xlu1 %v471_v17 }
 0x2c6   :  { %v466_v18 = vpop.f32.mrf.mxu1  ;;  %v1986_v19 = vpop.f32.mrf.mxu0 }
 0x2c7   :  { %v692_v20 = vsel %vm242_vm11, %v1986_v19, -inf }
 0x2c8   :  { %693 = vmax.xlane.f32.xlu1 %v692_v20 }
 0x2ce   :  { %v1990_v21 = vpop.f32.mrf.mxu1  ;;  %v667_v22 = vpop.f32.mrf.mxu0 }
 0x2cf   :  { %v583_v23 = vsel %vm242_vm11, %v1990_v21, -inf }
 0x2d0   :  { %584 = vmax.xlane.f32.xlu0 %v583_v23 }
 0x2d6   :  { %v578_v24 = vpop.f32.mrf.mxu1  ;;  %v1994_v25 = vpop.f32.mrf.mxu0 }
 0x2d7   :  { %v804_v26 = vsel %vm242_vm11, %v1994_v25, -inf }
 0x2d8   :  { %805 = vmax.xlane.f32.xlu1 %v804_v26 }
 0x2de   :  { %v1998_v27 = vpop.f32.mrf.mxu1  ;;  %v779_v28 = vpop.f32.mrf.mxu0 }
 0x2df   :  { %v695_v47 = vsel %vm242_vm11, %v1998_v27, -inf }
 0x2e6   :  { %v690_v29 = vpop.f32.mrf.mxu1  ;;  %v2000_v30 = vpop.f32.mrf.mxu0 }
 0x2e7   :  { %v916_v50 = vsel %vm242_vm11, %v2000_v30, -inf }
 0x2e9   :  { %360 = vmax.xlane.f32.xlu2 %v359_v31 }
 0x2ee   :  { %v2004_v32 = vpop.f32.mrf.mxu1  ;;  %v891_v33 = vpop.f32.mrf.mxu0 }
 0x2ef   :  { %v807_v34 = vsel %vm242_vm11, %v2004_v32, -inf }
 0x2f0   :  { %808 = vmax.xlane.f32.xlu1 %v807_v34 }
 0x2f1   :  { %469 = vmax.xlane.f32.xlu2 %v468_v35 }
 0x2f6   :  { %v802_v37 = vpop.f32.mrf.mxu1  ;;  %v2012_v38 = vpop.f32.mrf.mxu0 }
 0x2f7   :  { %v1028_v39 = vsel %vm242_vm11, %v2012_v38, -inf }
 0x2f8   :  { %1029 = vmax.xlane.f32.xlu0 %v1028_v39 }
 0x2f9   :  { %581 = vmax.xlane.f32.xlu2 %v580_v40 }
 0x2fb   :  { %v358_v42 = vpop.xlane.xlu0 %357 }
 0x2fc   :  { %v362_v45 = vsub.f32 %v1959_v61, %v358_v42  ;;  %v2037_v61 = vpop.permute.xlu1 %513 }
 0x2fe   :  { %v2018_v43 = vpop.f32.mrf.mxu1  ;;  %v1003_v44 = vpop.f32.mrf.mxu0  ;;  %v364_v48 = vmul.f32 1.442695, %v362_v45 }
 0x2ff   :  { %v919_v46 = vsel %vm242_vm11, %v2018_v43, -inf }
 0x300   :  { %920 = vmax.xlane.f32.xlu1 %v919_v46  ;;  %1634 = vpow2.f32 %v364_v48 }
 0x301   :  { %696 = vmax.xlane.f32.xlu2 %v695_v47 }
 0x306   :  { %v914_v49 = vpop.f32.mrf.mxu1  ;;  %v2027_v51 = vpop.eup %1634 }
 0x307   :  { %v368_v56 = vsel %vm242_vm11, %v2027_v51, 0.0 }
 0x309   :  { %917 = vmax.xlane.f32.xlu2 %v916_v50 }
 0x30e   :  { %v605_v52 = vpop.permute.xlu0 %604  ;;  %v2029_v53 = vpop.f32.mrf.mxu1 }
 0x30f   :  { %v610_v54 = vsel %vm272_vm10, %v605_v52, 0  ;;  %v1031_v55 = vsel %vm242_vm11, %v2029_v53, -inf }
 0x310   :  { %619 = vmatpush.bf16.msra.mxu2 %v610_v54  ;;  %1032 = vmax.xlane.f32.xlu1 %v1031_v55 }
 0x311   :  { %369 = vadd.xlane.f32.xlu2 %v368_v56 }
 0x313   :  { %v245_v57 = vpop.xlane.xlu2 %244 }
 0x314   :  { %v249_v58 = vsub.f32 %v1965_v1, %v245_v57 }
 0x316   :  { %v251_v59 = vmul.f32 1.442695, %v249_v58  ;;  %v1026_v60 = vpop.f32.mrf.mxu1 }
 0x318   :  { %1636 = vpow2.f32 %v251_v59 }
 0x31b   :  { %v2052_v11 = vpop.permute.xlu2 %625 }
 0x31e   :  { %v2039_v62 = vpop.eup %1636 }
 0x31f   :  { %v255_v63 = vsel %vm242_vm11, %v2039_v62, 0.0 }
 0x320   :  { %256 = vadd.xlane.f32.xlu1 %v255_v63 }
 0x322   :  { %v248_v0 = vpop.xlane.xlu1 %247 }
 0x323   :  { %v250_v2 = vsub.f32 %v1971_v6, %v248_v0  ;;  %v2055_v15 = vpop.permute.xlu2 %716 }
 0x325   :  { %v253_v4 = vmul.f32 1.442695, %v250_v2 }
 0x327   :  { %1638 = vpow2.f32 %v253_v4  ;;  %v386_v4 = vsel %vm272_vm10, %v1941_v41, 0 }
 0x32d   :  { %v2044_v9 = vpop.eup %1638 }
 0x32e   :  { %v258_v1 = vsel %vm242_vm11, %v2044_v9, 0.0 }
 0x32f   :  { %259 = vadd.xlane.f32.xlu2 %v258_v1 }
 0x333   :  { %v473_v10 = vpop.xlane.xlu1 %472 }
 0x334   :  { %v475_v6 = vsub.f32 %v1980_v14, %v473_v10 }
 0x336   :  { %v478_v17 = vmul.f32 1.442695, %v475_v6 }
 0x338   :  { %1640 = vpow2.f32 %v478_v17 }
 0x339   :  { %737 = vrot.lane.b32.xlu1 %v1885_v7, %s1749_s5 }
 0x33b   :  { %v694_v12 = vpop.xlane.xlu1 %693 }
 0x33c   :  { %v698_v57 = vsub.f32 %v1986_v19, %v694_v12 }
 0x33e   :  { %v2059_v24 = vpop.eup %1640  ;;  %v700_v58 = vmul.f32 1.442695, %v698_v57 }
 0x33f   :  { %v483_v29 = vsel %vm242_vm11, %v2059_v24, 0.0 }
 0x343   :  { %v585_v35 = vpop.xlane.xlu0 %584 }
 0x344   :  { %v587_v42 = vsub.f32 %v1990_v21, %v585_v35 }
 0x346   :  { %v590_v46 = vmul.f32 1.442695, %v587_v42 }
 0x347   :  { %940 = vrot.lane.b32.xlu2 %v1878_v3, %s1750_s27 }
 0x34b   :  { %v806_v18 = vpop.xlane.xlu1 %805 }
 0x34c   :  { %v810_v23 = vsub.f32 %v1994_v25, %v806_v18 }
 0x34e   :  { %v812_v28 = vmul.f32 1.442695, %v810_v23 }
 0x35c   :  { %v361_v20 = vpop.xlane.xlu2 %360 }
 0x35d   :  { %v363_v22 = vsub.f32 %v1973_v8, %v361_v20 }
 0x35f   :  { %v366_v26 = vmul.f32 1.442695, %v363_v22 }
 0x361   :  { %1642 = vpow2.f32 %v366_v26 }
 0x362   :  { %1644 = vpow2.f32 %v812_v28 }
 0x363   :  { %484 = vadd.xlane.f32.xlu1 %v483_v29  ;;  %v809_v48 = vpop.xlane.xlu1 %808  ;;  %v407_v29 = vsel %vm272_vm10, %v2010_v36, 0 }
 0x364   :  { %v470_v14 = vpop.xlane.xlu2 %469  ;;  %v811_v26 = vsub.f32 %v2004_v32, %v809_v48 }
 0x365   :  { %v474_v31 = vsub.f32 %v1969_v5, %v470_v14 }
 0x367   :  { %v2064_v33 = vpop.eup %1642  ;;  %v476_v34 = vmul.f32 1.442695, %v474_v31 }
 0x368   :  { %v371_v8 = vsel %vm242_vm11, %v2064_v33, 0.0  ;;  %v2068_v25 = vpop.eup %1644 }
 0x369   :  { %1646 = vpow2.f32 %v476_v34  ;;  %372 = vadd.xlane.f32.xlu0 %v371_v8  ;;  %v816_v44 = vsel %vm242_vm11, %v2068_v25, 0.0 }
 0x36c   :  { %v582_v37 = vpop.xlane.xlu2 %581 }
 0x36d   :  { %v586_v39 = vsub.f32 %v1977_v13, %v582_v37 }
 0x36f   :  { %v2071_v40 = vpop.eup %1646  ;;  %v588_v5 = vmul.f32 1.442695, %v586_v39 }
 0x370   :  { %817 = vadd.xlane.f32.xlu2 %v816_v44  ;;  %v480_v45 = vsel %vm242_vm11, %v2071_v40, 0.0  ;;  %v519_v44 = vsel %vm272_vm10, %v2037_v61, 0 }
 0x371   :  { %1648 = vpow2.f32 %v588_v5  ;;  %481 = vadd.xlane.f32.xlu0 %v480_v45 }
 0x372   :  { %1650 = vpow2.f32 %v590_v46 }
 0x373   :  { %v921_v50 = vpop.xlane.xlu1 %920 }
 0x374   :  { %v697_v52 = vpop.xlane.xlu2 %696  ;;  %v923_v32 = vsub.f32 %v2018_v43, %v921_v50 }
 0x375   :  { %v699_v0 = vsub.f32 %v1998_v27, %v697_v52 }
 0x376   :  { %v926_v8 = vmul.f32 1.442695, %v923_v32 }
 0x377   :  { %v2078_v47 = vpop.eup %1648  ;;  %v702_v19 = vmul.f32 1.442695, %v699_v0 }
 0x378   :  { %v592_v13 = vsel %vm242_vm11, %v2078_v47, 0.0  ;;  %v2083_v21 = vpop.eup %1650 }
 0x379   :  { %593 = vadd.xlane.f32.xlu0 %v592_v13  ;;  %v595_v49 = vsel %vm242_vm11, %v2083_v21, 0.0 }
 0x37c   :  { %849 = vrot.lane.b32.xlu1 %v1885_v7, %s1751_s3  ;;  %v918_v55 = vpop.xlane.xlu2 %917 }
 0x381   :  { %596 = vadd.xlane.f32.xlu0 %v595_v49 }
 0x383   :  { %v1033_v54 = vpop.xlane.xlu1 %1032 }
 0x384   :  { %v370_v60 = vpop.xlane.xlu2 %369  ;;  %v1035_v1 = vsub.f32 %v2029_v53, %v1033_v54  ;;  %v1030_v53 = vpop.xlane.xlu0 %1029  ;;  %v631_v54 = vsel %vm272_vm10, %v2052_v11, 0 }
 0x385   :  { %v1034_v22 = vsub.f32 %v2012_v38, %v1030_v53 }
 0x386   :  { %v1038_v12 = vmul.f32 1.442695, %v1035_v1 }
 0x387   :  { %v1036_v14 = vmul.f32 1.442695, %v1034_v22 }
 0x388   :  { %961 = vrot.lane.b32.xlu2 %v1885_v7, %s1750_s27  ;;  %s1428_s27 = sshll.u32 %s2288_s14, 4  ;;  %s1429_s27 = int_to_ptr.hbm [resolvable:$true] %s1428_s27 }
 0x393   :  { %v257_v56 = vpop.xlane.xlu1 %256 }
 0x394   :  { %1652 = vrcp.f32 %v257_v56 }
 0x395   :  { %828 = vrot.lane.b32.xlu0 %v1878_v3, %s1751_s3  ;;  %1654 = vpow2.f32 %v700_v58 }
 0x39a   :  { %v1653_v59 = vpop.eup %1652 }
 0x39b   :  { %v263_v63 = vmul.f32 %v1653_v59, %v2039_v62  ;;  %v2097_v10 = vpop.eup %1654  ;;  %v922_v62 = vsub.f32 %v2000_v30, %v918_v55 }
 0x39c   :  { %v704_v27 = vsel %vm242_vm11, %v2097_v10, 0.0 }
 0x39d   :  { %v265_v2 = vpack.c.bf16 %v263_v63, %v263_v63  ;;  %v924_v41 = vmul.f32 1.442695, %v922_v62 }
 0x39f   :  { %1455 = vmatmul.msk.bf16.vlgmr.msra.gmra.mxu3 %vm242_vm11, %v265_v2 }
 0x3a0   :  { %395 = vmatpush.bf16.msra.mxu3 %v386_v4 }
 0x3a2   :  { %v260_v6 = vpop.xlane.xlu2 %259 }
 0x3a3   :  { %1656 = vrcp.f32 %v260_v6 }
 0x3a4   :  { %1658 = vpow2.f32 %v702_v19 }
 0x3a5   :  { %1660 = vpow2.f32 %v1038_v12 }
 0x3a6   :  { %705 = vadd.xlane.f32.xlu1 %v704_v27  ;;  %1662 = vpow2.f32 %v924_v41 }
 0x3a7   :  { %1664 = vrcp.f32 %v370_v60 }
 0x3a8   :  { %1666 = vpow2.f32 %v1036_v14 }
 0x3a9   :  { %v1657_v17 = vpop.eup %1656 }
 0x3aa   :  { %v2102_v18 = vpop.eup %1658  ;;  %v264_v20 = vmul.f32 %v1657_v17, %v2044_v9  ;;  %v814_v9 = vmul.f32 1.442695, %v811_v26  ;;  %v941_v12 = vpop.permute.xlu2 %940 }
 0x3ab   :  { %v2106_v23 = vpop.eup %1660  ;;  %v707_v30 = vsel %vm242_vm11, %v2102_v18, 0.0  ;;  %v738_v13 = vpop.permute.xlu1 %737 }
 0x3ac   :  { %v266_v28 = vpack.c.bf16 %v264_v20, %v264_v20  ;;  %v1043_v38 = vsel %vm242_vm11, %v2106_v23, 0.0  ;;  %v2116_v31 = vpop.eup %1662  ;;  %1668 = vpow2.f32 %v814_v9  ;;  %v743_v63 = vsel %vm272_vm10, %v738_v13, 0 }
 0x3ad   :  { %v928_v34 = vsel %vm242_vm11, %v2116_v31, 0.0  ;;  %v1665_v36 = vpop.eup %1664  ;;  %1670 = vpow2.f32 %v926_v8  ;;  %v946_v20 = vsel %vm272_vm10, %v941_v12, 0 }
 0x3ae   :  { %708 = vadd.xlane.f32.xlu1 %v707_v30  ;;  %v376_v35 = vmul.f32 %v1665_v36, %v2027_v51  ;;  %v2122_v37 = vpop.eup %1666 }
 0x3af   :  { %1456 = vmatmul.msk.bf16.vlgmr.msrb.gmra.mxu3 %vm242_vm11, %v266_v28  ;;  %v1040_v5 = vsel %vm242_vm11, %v2122_v37, 0.0 }
 0x3b0   :  { %416 = vmatpush.bf16.msrb.mxu3 %v407_v29  ;;  %v378_v42 = vpack.c.bf16 %v376_v35, %v376_v35 }
 0x3b1   :  { %1044 = vadd.xlane.f32.xlu2 %v1043_v38 }
 0x3b2   :  { %v2124_v39 = vpop.eup %1668 }
 0x3b3   :  { %v819_v43 = vsel %vm242_vm11, %v2124_v39, 0.0  ;;  %v2133_v51 = vpop.eup %1670 }
 0x3b4   :  { %v931_v45 = vsel %vm242_vm11, %v2133_v51, 0.0 }
 0x3b6   :  { %929 = vadd.xlane.f32.xlu1 %v928_v34 }
 0x3be   :  { %1041 = vadd.xlane.f32.xlu1 %v1040_v5 }
 0x3bf   :  { %820 = vadd.xlane.f32.xlu0 %v819_v43  ;;  %1459 = vmatmul.msk.bf16.vlgmr.msra.gmra.mxu3 %vm242_vm11, %v378_v42 }
 0x3c0   :  { %528 = vmatpush.bf16.msra.mxu3 %v519_v44 }
 0x3c7   :  { %932 = vadd.xlane.f32.xlu0 %v931_v45 }
 0x3d6   :  { %v485_v50 = vpop.xlane.xlu1 %484 }
 0x3d7   :  { %1052 = vrot.lane.b32.xlu1 %v1878_v3, %s1752_s4 }
 0x3db   :  { %1073 = vrot.lane.b32.xlu0 %v1885_v7, %s1752_s4 }
 0x3dc   :  { %v373_v46 = vpop.xlane.xlu0 %372 }
 0x3dd   :  { %1672 = vrcp.f32 %v373_v46 }
 0x3e3   :  { %v1673_v48 = vpop.eup %1672  ;;  %v818_v27 = vpop.xlane.xlu2 %817 }
 0x3e4   :  { %v377_v61 = vmul.f32 %v1673_v48, %v2064_v33  ;;  %v482_v49 = vpop.xlane.xlu0 %481  ;;  %v722_v33 = vsel %vm272_vm10, %v2055_v15, 0 }
 0x3e5   :  { %1674 = vrcp.f32 %v482_v49 }
 0x3e6   :  { %v379_v52 = vpack.c.bf16 %v377_v61, %v377_v61  ;;  %1676 = vrcp.f32 %v485_v50 }
 0x3e8   :  { %1460 = vmatmul.msk.bf16.vlgmr.msrb.gmra.mxu3 %vm242_vm11, %v379_v52 }
 0x3e9   :  { %640 = vmatpush.bf16.msrb.mxu3 %v631_v54 }
 0x3eb   :  { %v1675_v3 = vpop.eup %1674  ;;  %v962_v30 = vpop.permute.xlu2 %961 }
 0x3ec   :  { %v488_v7 = vmul.f32 %v1675_v3, %v2071_v40  ;;  %v594_v55 = vpop.xlane.xlu0 %593  ;;  %v1677_v57 = vpop.eup %1676 }
 0x3ed   :  { %1678 = vrcp.f32 %v594_v55  ;;  %v489_v58 = vmul.f32 %v1677_v57, %v2059_v24 }
 0x3ee   :  { %v490_v56 = vpack.c.bf16 %v488_v7, %v488_v7  ;;  %v850_v4 = vpop.permute.xlu1 %849 }
 0x3ef   :  { %v491_v11 = vpack.c.bf16 %v489_v58, %v489_v58  ;;  %v855_v19 = vsel %vm272_vm10, %v850_v4, 0 }
 0x3f0   :  { %1463 = vmatmul.msk.bf16.vlgmr.msrb.gmra.mxu2 %vm242_vm11, %v490_v56 }
 0x3f1   :  { %731 = vmatpush.bf16.msrb.mxu2 %v722_v33 }
 0x3f3   :  { %v1679_v60 = vpop.eup %1678 }
 0x3f4   :  { %v597_v59 = vpop.xlane.xlu0 %596  ;;  %v600_v40 = vmul.f32 %v1679_v60, %v2078_v47 }
 0x3f5   :  { %1680 = vrcp.f32 %v597_v59 }
 0x3f6   :  { %v602_v0 = vpack.c.bf16 %v600_v40, %v600_v40 }
 0x3f8   :  { %1464 = vmatmul.msk.bf16.vlgmr.msra.gmra.mxu3 %vm242_vm11, %v491_v11 }
 0x3f9   :  { %752 = vmatpush.bf16.msra.mxu3 %v743_v63 }
 0x3fb   :  { %v1681_v2 = vpop.eup %1680 }
 0x3fc   :  { %v601_v15 = vmul.f32 %v1681_v2, %v2083_v21 }
 0x3fe   :  { %v603_v1 = vpack.c.bf16 %v601_v15, %v601_v15 }
 0x400   :  { %1467 = vmatmul.msk.bf16.vlgmr.msra.gmra.mxu2 %vm242_vm11, %v602_v0 }
 0x407   :  { %v829_v24 = vpop.permute.xlu0 %828 }
 0x408   :  { %v834_v6 = vsel %vm272_vm10, %v829_v24, 0  ;;  %1468 = vmatmul.msk.bf16.vlgmr.msrb.gmra.mxu3 %vm242_vm11, %v603_v1 }
 0x409   :  { %864 = vmatpush.bf16.msrb.mxu3 %v855_v19  ;;  %843 = vmatpush.bf16.msra.mxu2 %v834_v6 }
 0x419   :  { %v706_v62 = vpop.xlane.xlu1 %705 }
 0x41a   :  { %1682 = vrcp.f32 %v706_v62 }
 0x420   :  { %v1683_v47 = vpop.eup %1682 }
 0x421   :  { %v712_v41 = vmul.f32 %v1683_v47, %v2097_v10  ;;  %v709_v17 = vpop.xlane.xlu1 %708  ;;  %v967_v10 = vsel %vm272_vm10, %v962_v30, 0 }
 0x422   :  { %1684 = vrcp.f32 %v709_v17  ;;  %v2157_v21 = vpop.f32.mrf.mxu3 }
 0x423   :  { %v714_v53 = vpack.c.bf16 %v712_v41, %v712_v41  ;;  %1686 = vrcp.f32 %v818_v27 }
 0x424   :  { %v1045_v52 = vpop.xlane.xlu2 %1044 }
 0x425   :  { %1471 = vmatmul.msk.bf16.vlgmr.msrb.gmra.mxu2 %vm242_vm11, %v714_v53 }
 0x426   :  { %955 = vmatpush.bf16.msrb.mxu2 %v946_v20 }
 0x428   :  { %v1685_v22 = vpop.eup %1684 }
 0x429   :  { %v713_v26 = vmul.f32 %v1685_v22, %v2102_v18  ;;  %v1687_v14 = vpop.eup %1686  ;;  %v930_v36 = vpop.xlane.xlu1 %929 }
 0x42a   :  { %v287_v28 = vpop.f32.mrf.mxu3  ;;  %v824_v38 = vmul.f32 %v1687_v14, %v2068_v25 }
 0x42b   :  { %v715_v29 = vpack.c.bf16 %v713_v26, %v713_v26 }
 0x42c   :  { %v826_v34 = vpack.c.bf16 %v824_v38, %v824_v38 }
 0x42d   :  { %1472 = vmatmul.msk.bf16.vlgmr.msra.gmra.mxu3 %vm242_vm11, %v715_v29 }
 0x42e   :  { %976 = vmatpush.bf16.msra.mxu3 %v967_v10 }
 0x431   :  { %v1042_v44 = vpop.xlane.xlu1 %1041 }
 0x432   :  { %v821_v9 = vpop.xlane.xlu0 %820  ;;  %v2165_v32 = vpop.f32.mrf.mxu3 }
 0x433   :  { %1688 = vrcp.f32 %v821_v9  ;;  %v1539_v9 = vld [vmem:[%s2280_s6 + $0x8] sm:$0xff] }
 0x434   :  { %1690 = vrcp.f32 %v930_v36  ;;  %1205 = vmatpush.bf16.msra.mxu0 %v1539_v9  ;;  %v1623_v36 = vld [vmem:[%s2281_s7] ss:$0 sm:$0xff] }
 0x435   :  { %1475 = vmatmul.msk.bf16.vlgmr.msra.gmra.mxu2 %vm242_vm11, %v826_v34  ;;  %v1538_v34 = vld [vmem:[%s2280_s6] sm:$0xff]  ;;  %145 = vst.msk [vmem:[#allocation3] sm:$0xff] %vm56_vm0, %v1623_v36 }
 0x436   :  { %146 = vst.msk [vmem:[#allocation3 + $0x8] sm:$0xff] %vm56_vm0, %v1623_v36 }
 0x438   :  { %1206 = vmatpush.bf16.msra.mxu0 %v1538_v34 }
 0x439   :  { %v1689_v18 = vpop.eup %1688 }
 0x43a   :  { %v825_v8 = vmul.f32 %v1689_v18, %v2124_v39  ;;  %v308_v35 = vpop.f32.mrf.mxu3  ;;  %v1691_v42 = vpop.eup %1690 }
 0x43b   :  { %v933_v43 = vpop.xlane.xlu0 %932  ;;  %v936_v25 = vmul.f32 %v1691_v42, %v2116_v31 }
 0x43c   :  { %v827_v5 = vpack.c.bf16 %v825_v8, %v825_v8  ;;  %1692 = vrcp.f32 %v933_v43 }
 0x43d   :  { %v938_v46 = vpack.c.bf16 %v936_v25, %v936_v25  ;;  %1694 = vrcp.f32 %v1042_v44 }
 0x43e   :  { %1476 = vmatmul.msk.bf16.vlgmr.msrb.gmra.mxu3 %vm242_vm11, %v827_v5  ;;  %1696 = vrcp.f32 %v1045_v52 }
 0x442   :  { %v397_v45 = vpop.f32.mrf.mxu3  ;;  %v1693_v13 = vpop.eup %1692 }
 0x443   :  { %v937_v48 = vmul.f32 %v1693_v13, %v2133_v51  ;;  %v1695_v50 = vpop.eup %1694 }
 0x444   :  { %v1048_v7 = vmul.f32 %v1695_v50, %v2122_v37  ;;  %v1697_v56 = vpop.eup %1696 }
 0x445   :  { %1479 = vmatmul.msk.bf16.vlgmr.msrb.gmra.mxu2 %vm242_vm11, %v938_v46  ;;  %v939_v54 = vpack.c.bf16 %v937_v48, %v937_v48  ;;  %v1049_v51 = vmul.f32 %v1697_v56, %v2106_v23 }
 0x446   :  { %v1050_v55 = vpack.c.bf16 %v1048_v7, %v1048_v7 }
 0x447   :  { %v1051_v57 = vpack.c.bf16 %v1049_v51, %v1049_v51 }
 0x449   :  { %v1053_v61 = vpop.permute.xlu1 %1052 }
 0x44a   :  { %v1058_v39 = vsel %vm272_vm10, %v1053_v61, 0  ;;  %v399_v49 = vpop.f32.mrf.mxu3 }
 0x44b   :  { %1067 = vmatpush.bf16.msra.mxu2 %v1058_v39 }
 0x44d   :  { %v1074_v3 = vpop.permute.xlu0 %1073 }
 0x44e   :  { %v1079_v31 = vsel %vm272_vm10, %v1074_v3, 0  ;;  %1480 = vmatmul.msk.bf16.vlgmr.msra.gmra.mxu3 %vm242_vm11, %v939_v54 }
 0x44f   :  { %1088 = vmatpush.bf16.msrb.mxu3 %v1079_v31 }
 0x455   :  { %1483 = vmatmul.msk.bf16.vlgmr.msra.gmra.mxu2 %vm242_vm11, %v1050_v55 }
 0x45e   :  { %1484 = vmatmul.msk.bf16.vlgmr.msrb.gmra.mxu3 %vm242_vm11, %v1051_v57 }
 0x46b   :  { %v418_v33 = vpop.f32.mrf.mxu3 }
 0x46c   :  { %v1585_v58 = vpack.i.bf16 %v418_v33, %v397_v45 }
 0x46e   :  { %1586 = vrot.lane.b32.xlu0 %v1585_v58, %s1753_s28 }
 0x473   :  { %v420_v11 = vpop.f32.mrf.mxu3  ;;  %v509_v59 = vpop.f32.mrf.mxu2 }
 0x47b   :  { %v511_v60 = vpop.f32.mrf.mxu2  ;;  %v530_v63 = vpop.f32.mrf.mxu3 }
 0x47c   :  { %v1590_v40 = vpack.i.bf16 %v530_v63, %v509_v59 }
 0x47e   :  { %1591 = vrot.lane.b32.xlu1 %v1590_v40, %s1754_s29 }
 0x483   :  { %v532_v37 = vpop.f32.mrf.mxu3  ;;  %v621_v0 = vpop.f32.mrf.mxu2 }
 0x48b   :  { %v623_v2 = vpop.f32.mrf.mxu2  ;;  %v642_v15 = vpop.f32.mrf.mxu3 }
 0x48c   :  { %v1595_v23 = vpack.i.bf16 %v642_v15, %v621_v0 }
 0x48e   :  { %1596 = vrot.lane.b32.xlu0 %v1595_v23, %s1755_s30 }
 0x493   :  { %v644_v4 = vpop.f32.mrf.mxu3 }
 0x4a8   :  { %v733_v1 = vpop.f32.mrf.mxu2 }
 0x4b0   :  { %v735_v24 = vpop.f32.mrf.mxu2  ;;  %v754_v19 = vpop.f32.mrf.mxu3 }
 0x4b1   :  { %v1600_v6 = vpack.i.bf16 %v754_v19, %v733_v1  ;;  %v1171_v1 = vld [vmem:[#allocation3] sm:$0xff] }
 0x4b3   :  { %1601 = vrot.lane.b32.xlu1 %v1600_v6, %s1756_s15  ;;  %v1172_v6 = vld [vmem:[#allocation3 + $0x8] sm:$0xff] }
 0x4b8   :  { %v756_v12 = vpop.f32.mrf.mxu3  ;;  %v845_v62 = vpop.f32.mrf.mxu2 }
 0x4c0   :  { %v847_v47 = vpop.f32.mrf.mxu2 }
 0x4c1   :  { %v866_v27 = vpop.f32.mrf.mxu3 }
 0x4c2   :  { %v1605_v41 = vpack.i.bf16 %v866_v27, %v845_v62  ;;  %v1220_v62 = vld [vmem:[%s2275_s1] sm:$0xff] }
 0x4c4   :  { %1606 = vrot.lane.b32.xlu2 %v1605_v41, %s1757_s16 }
 0x4c8   :  { %v957_v17 = vpop.f32.mrf.mxu2 }
 0x4c9   :  { %v868_v53 = vpop.f32.mrf.mxu3 }
 0x4ca   :  { %v1221_v53 = vld [vmem:[%s2275_s1 + $0x8] sm:$0xff] }
 0x4d0   :  { %v959_v20 = vpop.f32.mrf.mxu2 }
 0x4d1   :  { %v978_v22 = vpop.f32.mrf.mxu3 }
 0x4d2   :  { %v1610_v26 = vpack.i.bf16 %v978_v22, %v957_v17 }
 0x4d4   :  { %1611 = vrot.lane.b32.xlu0 %v1610_v26, %s1758_s17 }
 0x4d8   :  { %v1069_v30 = vpop.f32.mrf.mxu2 }
 0x4d9   :  { %v980_v28 = vpop.f32.mrf.mxu3 }
 0x4e0   :  { %v1071_v29 = vpop.f32.mrf.mxu2  ;;  %v1587_v18 = vpop.permute.xlu0 %1586 }
 0x4e1   :  { %v1090_v14 = vpop.f32.mrf.mxu3  ;;  %v1589_v42 = vunpack.i.h.bf16 %v1587_v18  ;;  %v1588_v5 = vunpack.i.l.bf16 %v1587_v18 }
 0x4e2   :  { %v1615_v10 = vpack.i.bf16 %v1090_v14, %v1069_v30 }
 0x4e3   :  { %v1151_v61 = vsel %vm198_vm9, %v2165_v32, %v1589_v42  ;;  %v1150_v39 = vsel %vm198_vm9, %v2157_v21, %v1588_v5 }
 0x4e4   :  { %1616 = vrot.lane.b32.xlu1 %v1615_v10, %s1759_s18 }
 0x4e9   :  { %v1092_v38 = vpop.f32.mrf.mxu3 }
 0x4f0   :  { %v1592_v8 = vpop.permute.xlu1 %1591 }
 0x4f1   :  { %v1594_v25 = vunpack.i.h.bf16 %v1592_v8  ;;  %v1593_v44 = vunpack.i.l.bf16 %v1592_v8  ;;  %v1541_v8 = vld [vmem:[%s2284_s10 + $0x8] sm:$0xff] }
 0x4f2   :  { %1319 = vmatpush.bf16.msra.mxu1 %v1541_v8 }
 0x4f3   :  { %v1153_v50 = vsel %vm242_vm11, %v1151_v61, %v1594_v25  ;;  %v1152_v52 = vsel %vm242_vm11, %v1150_v39, %v1593_v44  ;;  %v1549_v25 = vld [vmem:[%s2286_s12 + $0x38] sm:$0xff]  ;;  %v1547_v39 = vld [vmem:[%s2286_s12 + $0x28] sm:$0xff] }
 0x4f4   :  { %1398 = vmatpush.bf16.msrb.mxu2 %v1549_v25 }
 0x500   :  { %v1597_v35 = vpop.permute.xlu0 %1596 }
 0x501   :  { %v1599_v45 = vunpack.i.h.bf16 %v1597_v35  ;;  %v1598_v46 = vunpack.i.l.bf16 %v1597_v35 }
 0x503   :  { %v1155_v3 = vsel %vm1154_vm12, %v1152_v52, %v1598_v46  ;;  %v1156_v31 = vsel %vm1154_vm12, %v1153_v50, %v1599_v45  ;;  %v1548_v46 = vld [vmem:[%s2286_s12 + $0x30] sm:$0xff] }
 0x504   :  { %1399 = vmatpush.bf16.msrb.mxu2 %v1548_v46 }
 0x508   :  { %1400 = vmatpush.bf16.msrb.mxu2 %v1547_v39 }
 0x51e   :  { %v1607_v54 = vpop.permute.xlu2 %1606 }
 0x51f   :  { %v1609_v57 = vunpack.i.h.bf16 %v1607_v54  ;;  %v1608_v33 = vunpack.i.l.bf16 %v1607_v54 }
 0x525   :  { %v1602_v43 = vpop.permute.xlu1 %1601 }
 0x526   :  { %v1604_v13 = vunpack.i.h.bf16 %v1602_v43  ;;  %v1603_v48 = vunpack.i.l.bf16 %v1602_v43  ;;  %v1540_v43 = vld [vmem:[%s2284_s10] sm:$0xff] }
 0x527   :  { %1320 = vmatpush.bf16.msra.mxu1 %v1540_v43 }
 0x528   :  { %v1158_v7 = vsel %vm1157_vm13, %v1155_v3, %v1603_v48  ;;  %v1159_v55 = vsel %vm1157_vm13, %v1156_v31, %v1604_v13 }
 0x529   :  { %v1161_v21 = vsel %vm1160_vm14, %v1158_v7, %v1608_v33  ;;  %v1162_v58 = vsel %vm1160_vm14, %v1159_v55, %v1609_v57  ;;  %v1624_v57 = vld [vmem:[%s2282_s8] ss:$0 sm:$0xff] }
 0x546   :  { %v1612_v49 = vpop.permute.xlu0 %1611 }
 0x547   :  { %v1614_v56 = vunpack.i.h.bf16 %v1612_v49  ;;  %v1613_v51 = vunpack.i.l.bf16 %v1612_v49 }
 0x549   :  { %v1164_v60 = vsel %vm1163_vm15, %v1161_v21, %v1613_v51  ;;  %v1165_v63 = vsel %vm1163_vm15, %v1162_v58, %v1614_v56  ;;  %v1625_v58 = vld [vmem:[%s2283_s9] ss:$0 sm:$0xff] }
 0x556   :  { %v1617_v32 = vpop.permute.xlu1 %1616 }
 0x557   :  { %v1619_v11 = vunpack.i.h.bf16 %v1617_v32  ;;  %v1618_v59 = vunpack.i.l.bf16 %v1617_v32 }
 0x559   :  { %v1167_v40 = vsel %vm1166_vm1, %v1164_v60, %v1618_v59  ;;  %v1168_v37 = vsel %vm1166_vm1, %v1165_v63, %v1619_v11 }
 0x55a   :  { %v1169_v0 = vpack.c.bf16 %v1167_v40, %v1167_v40  ;;  %v1170_v2 = vpack.c.bf16 %v1168_v37, %v1168_v37 }
 0x55c   :  { %v1181_v15 = vunpack.c.l.b16 %v1169_v0  ;;  %v1182_v23 = vunpack.c.l.b16 %v1170_v2  ;;  %v1545_v0 = vld [vmem:[%s2286_s12 + $0x18] sm:$0xff]  ;;  %v1544_v2 = vld [vmem:[%s2286_s12 + $0x10] sm:$0xff] }
 0x55e   :  { %v1183_v4 = vpack.c.b16 %v1182_v23, %v1181_v15  ;;  %v1543_v15 = vld [vmem:[%s2286_s12 + $0x8] sm:$0xff]  ;;  %v1542_v23 = vld [vmem:[%s2286_s12] sm:$0xff] }
 0x560   :  { %1493 = vmatmul.msk.bf16.vlgmr.msra.gmra.mxu0 %vm56_vm0, %v1183_v4 }
 0x5dd   :  { %v1208_v24 = vpop.f32.mrf.mxu0 }
 0x5de   :  { %v1213_v19 = vadd.f32 %v1208_v24, %v1171_v1  ;;  %v1626_v1 = vld [vmem:[%s2285_s11] ss:$0 sm:$0xff]  ;;  %s1760_s11 = smov [#allocation6]  }
 0x5e0   :  { %1215 = vst.msk [vmem:[#allocation3] sm:$0xff] %vm56_vm0, %v1213_v19 }
 0x5e5   :  { %v1210_v12 = vpop.f32.mrf.mxu0 }
 0x5e6   :  { %v1214_v47 = vadd.f32 %v1210_v12, %v1172_v6 }
 0x5e7   :  { %v1222_v27 = vld [vmem:[#allocation3] sm:$0xff] }
 0x5e8   :  { %1216 = vst.msk [vmem:[#allocation3 + $0x8] sm:$0xff] %vm56_vm0, %v1214_v47  ;;  %v2204_v41 = vadd.f32 %v1222_v27, %v1220_v62 }
 0x5ea   :  { %v1228_v17 = vsel %vm56_vm0, %v2204_v41, 0.0 }
 0x5eb   :  { %1229 = vadd.xlane.f32.xlu0 %v1228_v17 }
 0x5ef   :  { %v1223_v20 = vld [vmem:[#allocation3 + $0x8] sm:$0xff] }
 0x5f0   :  { %v2211_v22 = vadd.f32 %v1223_v20, %v1221_v53  ;;  %v1627_v53 = vld [vmem:[%s2287_s13] ss:$0 sm:$0xff]  ;;  %s1761_s13 = smov 128  }
 0x5f2   :  { %v1231_v26 = vsel %vm56_vm0, %v2211_v22, 0.0 }
 0x5f3   :  { %1232 = vadd.xlane.f32.xlu1 %v1231_v26 }
 0x65e   :  { %v1230_v30 = vpop.xlane.xlu0 %1229 }
 0x65f   :  { %v1241_v28 = vmul.f32 %v1230_v30, %v1854_v16 }
 0x661   :  { %v1243_v29 = vsub.f32 %v2204_v41, %v1241_v28 }
 0x663   :  { %v1245_v14 = vmul.f32 %v1243_v29, %v1243_v29 }
 0x665   :  { %v1247_v10 = vsel %vm56_vm0, %v1245_v14, 0.0 }
 0x666   :  { %1248 = vadd.xlane.f32.xlu2 %v1247_v10  ;;  %v1233_v38 = vpop.xlane.xlu1 %1232 }
 0x667   :  { %v1242_v9 = vmul.f32 %v1233_v38, %v1854_v16 }
 0x669   :  { %v1244_v34 = vsub.f32 %v2211_v22, %v1242_v9 }
 0x66b   :  { %v1246_v36 = vmul.f32 %v1244_v34, %v1244_v34 }
 0x66d   :  { %v1250_v18 = vsel %vm56_vm0, %v1246_v36, 0.0 }
 0x66e   :  { %1251 = vadd.xlane.f32.xlu0 %v1250_v18 }
 0x6d9   :  { %v1249_v35 = vpop.xlane.xlu2 %1248 }
 0x6da   :  { %v1253_v42 = vmul.f32 %v1249_v35, %v1854_v16 }
 0x6dc   :  { %v1255_v5 = vadd.f32 1e-05, %v1253_v42 }
 0x6de   :  { %1698 = vrsqrt.f32 %v1255_v5  ;;  %vm1263_vm3 = vweird.f32 %v1255_v5 }
 0x6e1   :  { %v1252_v44 = vpop.xlane.xlu0 %1251 }
 0x6e2   :  { %v1254_v45 = vmul.f32 %v1252_v44, %v1854_v16  ;;  %v1546_v16 = vld [vmem:[%s2286_s12 + $0x20] sm:$0xff]  ;;  %s1426_s12 = sshll.u32 %s1760_s11, 4  ;;  %s1427_s12 = int_to_ptr.vmem [resolvable:$true] %s1426_s12 }
 0x6e3   :  { %1401 = vmatpush.bf16.msrb.mxu2 %v1546_v16 }
 0x6e4   :  { %v1699_v13 = vpop.eup %1698  ;;  %v1256_v48 = vadd.f32 1e-05, %v1254_v45 }
 0x6e5   :  { %v1258_v61 = vmul.f32 %v1699_v13, %v1255_v5  ;;  %vm1264_vm2 = vweird.f32 %v1699_v13 }
 0x6e6   :  { %1700 = vrsqrt.f32 %v1256_v48  ;;  %vm1265_vm4 = vmor %vm1263_vm3, %vm1264_vm2  ;;  %vm1273_vm6 = vweird.f32 %v1256_v48 }
 0x6e7   :  { %v1259_v49 = vmul.f32 %v1699_v13, %v1258_v61  ;;  %1402 = vmatpush.bf16.msrb.mxu2 %v1545_v0 }
 0x6e9   :  { %v1260_v50 = vmul.f32 0.5, %v1259_v49 }
 0x6eb   :  { %v1261_v52 = vsub.f32 1.5, %v1260_v50  ;;  %1403 = vmatpush.bf16.msrb.mxu2 %v1544_v2 }
 0x6ec   :  { %v1701_v54 = vpop.eup %1700 }
 0x6ed   :  { %v1262_v3 = vmul.f32 %v1699_v13, %v1261_v52  ;;  %v1268_v31 = vmul.f32 %v1701_v54, %v1256_v48  ;;  %vm1274_vm5 = vweird.f32 %v1701_v54 }
 0x6ee   :  { %vm1275_vm7 = vmor %vm1273_vm6, %vm1274_vm5 }
 0x6ef   :  { %v1269_v7 = vmul.f32 %v1701_v54, %v1268_v31  ;;  %v1266_v55 = vsel %vm1265_vm4, %v1699_v13, %v1262_v3  ;;  %1404 = vmatpush.bf16.msrb.mxu2 %v1543_v15 }
 0x6f0   :  { %v1277_v33 = vmul.f32 %v1266_v55, %v1243_v29 }
 0x6f1   :  { %v1270_v56 = vmul.f32 0.5, %v1269_v7 }
 0x6f2   :  { %v1282_v11 = vmul.f32 %v1624_v57, %v1277_v33 }
 0x6f3   :  { %v1271_v51 = vsub.f32 1.5, %v1270_v56  ;;  %1405 = vmatpush.bf16.msrb.mxu2 %v1542_v23 }
 0x6f4   :  { %v1287_v63 = vadd.f32 %v1625_v58, %v1282_v11 }
 0x6f5   :  { %v1272_v32 = vmul.f32 %v1701_v54, %v1271_v51 }
 0x6f7   :  { %v1276_v21 = vsel %vm1275_vm7, %v1701_v54, %v1272_v32 }
 0x6f8   :  { %v1278_v59 = vmul.f32 %v1276_v21, %v1244_v34 }
 0x6fa   :  { %v1283_v60 = vmul.f32 %v1624_v57, %v1278_v59 }
 0x6fc   :  { %v1288_v40 = vadd.f32 %v1625_v58, %v1283_v60 }
 0x6fe   :  { %v1289_v37 = vpack.c.bf16 %v1288_v40, %v1287_v63 }
 0x700   :  { %1502 = vmatmul.msk.bf16.vlgmr.msra.gmra.mxu1 %vm56_vm0, %v1289_v37 }
 0x77d   :  { %v1322_v4 = vpop.f32.mrf.mxu1 }
 0x77e   :  { %v1323_v24 = vadd.f32 %v1626_v1, %v1322_v4 }
 0x780   :  { %v1329_v6 = vmul.f32 0.01, %v1323_v24  ;;  %vm1327_vm8 = vcmp.gt.f32.partialorder %v1323_v24, 0.0 }
 0x782   :  { %v1331_v47 = vsel %vm1327_vm8, %v1323_v24, %v1329_v6 }
 0x785   :  { %v1324_v19 = vpop.f32.mrf.mxu1 }
 0x786   :  { %v1325_v12 = vadd.f32 %v1626_v1, %v1324_v19 }
 0x788   :  { %vm1328_vm9 = vcmp.gt.f32.partialorder %v1325_v12, 0.0  ;;  %v1330_v62 = vmul.f32 0.01, %v1325_v12 }
 0x78a   :  { %v1332_v27 = vsel %vm1328_vm9, %v1325_v12, %v1330_v62 }
 0x78b   :  { %v1333_v17 = vpack.c.bf16 %v1332_v27, %v1331_v47 }
 0x78d   :  { %1406 = vmatmul.bf16.vlgmr.msrb.gmra.mxu2 %v1333_v17 }
 0x810   :  { %v1407_v20 = vpop.f32.mrf.mxu2 }
 0x811   :  { %v1412_v26 = vadd.f32 %v1407_v20, %v2204_v41 }
 0x813   :  { %v1418_v30 = vadd.f32 %v1627_v53, %v1412_v26 }
 0x815   :  { %1420 = vst.msk [vmem:[#allocation6] sm:$0xff] %vm56_vm0, %v1418_v30 }
 0x818   :  { %v1409_v28 = vpop.f32.mrf.mxu2 }
 0x819   :  { %v1413_v29 = vadd.f32 %v1409_v28, %v2211_v22 }
 0x81b   :  { %v1419_v14 = vadd.f32 %v1627_v53, %v1413_v29 }
 0x81d   :  { %1421 = vst.msk [vmem:[#allocation6 + $0x8] sm:$0xff] %vm56_vm0, %v1419_v14 }
 0x81e   :  { %1434 = dma.vmem_to_hbm [thread:$0]  %s1427_s12, 256, %s1429_s27, [#allocation7], %s1761_s13, %s1761_s13, %s1754_s29  }
 0x81f   :  { %1726 = dma.done.wait [#allocation7], 256  }
 0x820   :  { %1727 = vsyncadd [#allocation7], 4294967040 }
 0x821   :  { %1439 = vsyncpa [#allocation7], 1 }

</bundles_post_ra>
